<compile_context>
chip_gen: v7x
topology: tpu7x:2x2x1
jax: 0.10.0
libtpu: 0.0.40
codegen_flags: <defaults>
</compile_context>

<pallas_src>
import jax
import jax.numpy as jnp
from jax.experimental import pallas as pl
from jax.experimental.pallas import tpu as pltpu

# ---- small synthetic DeiT3 config (DeiT3-small scaled down: 384/12/6 -> 32/2/4) ----
IMG = 16
PATCH = 8
IN_CHANS = 3
EMBED_DIM = 32          # n_outputs of the module
DEPTH = 2
NUM_HEADS = 4
MLP_RATIO = 4
HEAD_DIM = EMBED_DIM // NUM_HEADS
HIDDEN = EMBED_DIM * MLP_RATIO
NUM_PATCHES = (IMG // PATCH) ** 2
NUM_TOKENS = NUM_PATCHES + 1          # +1 CLS token (DeiT3 has no distillation token)
NPAD = 8                              # token axis padded to a sublane multiple (5 -> 8)
PDIM = IN_CHANS * PATCH * PATCH       # flattened patch feature dim (C*P*P)
LN_EPS = 1e-6                         # timm ViT uses LayerNorm(eps=1e-6)
LAYER_SCALE_INIT = 1e-6               # DeiT3 init_values
NEG_INF = -1e30


# ---------------- in-kernel helpers (operate on values, not refs) ----------------
def _layernorm(x, g, b):
    mean = jnp.mean(x, axis=-1, keepdims=True)
    var = jnp.mean(jnp.square(x - mean), axis=-1, keepdims=True)
    return (x - mean) * jax.lax.rsqrt(var + LN_EPS) * g + b


def _gelu(x):
    # exact (erf) GELU, matching torch.nn.GELU default used by timm Mlp
    return 0.5 * x * (1.0 + jax.lax.erf(x * (2.0 ** -0.5)))


def _attention(qkv, attn_bias):
    # qkv: (NPAD, 3*D) contiguous [q|k|v]; q columns already carry the softmax scale.
    heads = []
    for h in range(NUM_HEADS):
        q = qkv[:, h * HEAD_DIM:(h + 1) * HEAD_DIM]
        k = qkv[:, EMBED_DIM + h * HEAD_DIM:EMBED_DIM + (h + 1) * HEAD_DIM]
        v = qkv[:, 2 * EMBED_DIM + h * HEAD_DIM:2 * EMBED_DIM + (h + 1) * HEAD_DIM]
        # s = q @ k.T without an explicit transpose
        s = jax.lax.dot_general(q, k, (((1,), (1,)), ((), ())),
                                preferred_element_type=jnp.float32)
        s = s + attn_bias                                   # mask padded key columns
        s = s - jnp.max(s, axis=-1, keepdims=True)
        p = jnp.exp(s)
        p = p * pl.reciprocal(jnp.sum(p, axis=-1, keepdims=True), approx=True)
        heads.append(jnp.dot(p, v, preferred_element_type=jnp.float32))
    return jnp.concatenate(heads, axis=-1)                  # (NPAD, D)


# ---------------- the single fused kernel ----------------
def _deit_kernel(patches_ref, tok_add_ref, tok_mask_ref, attn_bias_ref,
                 patch_w_ref, patch_b_ref,
                 qkv_w_ref, qkv_b_ref, proj_w_ref, proj_b_ref,
                 ln1_g_ref, ln1_b_ref, ls1_ref,
                 fc1_w_ref, fc1_b_ref, fc2_w_ref, fc2_b_ref,
                 ln2_g_ref, ln2_b_ref, ls2_ref,
                 norm_g_ref, norm_b_ref,
                 out_ref):
    # --- patch embed + (pos embed on patch tokens only, CLS prepended: DeiT3 no_embed_class) ---
    pe = jnp.dot(patches_ref[0], patch_w_ref[...],
                 preferred_element_type=jnp.float32) + patch_b_ref[...]   # (NPAD, D)
    # tok_mask zeroes the CLS slot and padded rows (which only contained the bias);
    # tok_add injects the CLS token (row 0) and the positional embeddings (rows 1..NUM_PATCHES).
    x = pe * tok_mask_ref[...] + tok_add_ref[...]                         # (NPAD, D)

    attn_bias = attn_bias_ref[...]                                        # (1, NPAD)

    for d in range(DEPTH):                      # static unroll over depth
        # --- attention branch (LN1 -> QKV -> attn -> proj -> LayerScale residual) ---
        h = _layernorm(x, ln1_g_ref[d], ln1_b_ref[d])
        qkv = jnp.dot(h, qkv_w_ref[d], preferred_element_type=jnp.float32) + qkv_b_ref[d]
        a = _attention(qkv, attn_bias)
        a = jnp.dot(a, proj_w_ref[d], preferred_element_type=jnp.float32) + proj_b_ref[d]
        x = x + ls1_ref[d] * a

        # --- MLP branch (LN2 -> fc1+GELU -> fc2 -> LayerScale residual) ---
        h = _layernorm(x, ln2_g_ref[d], ln2_b_ref[d])
        h = jnp.dot(h, fc1_w_ref[d], preferred_element_type=jnp.float32) + fc1_b_ref[d]
        h = _gelu(h)
        h = jnp.dot(h, fc2_w_ref[d], preferred_element_type=jnp.float32) + fc2_b_ref[d]
        x = x + ls2_ref[d] * h

    # final norm, then 'token' global pool (CLS row); head/fc_norm are Identity.
    y = _layernorm(x, norm_g_ref[...], norm_b_ref[...])
    out_ref[0] = y[0:1, :]


# ---------------- parameters (deterministic synthetic init, PyTorch-like layout) ----------------
def init_params(key):
    keys = iter(jax.random.split(key, 8 + 8 * DEPTH))

    def nrm(shape, std=0.02):
        return (std * jax.random.normal(next(keys), shape)).astype(jnp.float32)

    params = {
        "patch_w": nrm((EMBED_DIM, IN_CHANS, PATCH, PATCH)),   # Conv2d weight layout (O, C, P, P)
        "patch_b": jnp.zeros((EMBED_DIM,), jnp.float32),
        "cls_token": nrm((1, 1, EMBED_DIM)),
        "pos_embed": nrm((1, NUM_PATCHES, EMBED_DIM)),         # DeiT3: no_embed_class -> patches only
        "norm_g": jnp.ones((EMBED_DIM,), jnp.float32),
        "norm_b": jnp.zeros((EMBED_DIM,), jnp.float32),
        "blocks": [],
    }
    for _ in range(DEPTH):
        params["blocks"].append({
            "ln1_g": jnp.ones((EMBED_DIM,), jnp.float32),
            "ln1_b": jnp.zeros((EMBED_DIM,), jnp.float32),
            "qkv_w": nrm((EMBED_DIM, 3 * EMBED_DIM)),
            "qkv_b": jnp.zeros((3 * EMBED_DIM,), jnp.float32),
            "proj_w": nrm((EMBED_DIM, EMBED_DIM)),
            "proj_b": jnp.zeros((EMBED_DIM,), jnp.float32),
            "ls1": LAYER_SCALE_INIT * jnp.ones((EMBED_DIM,), jnp.float32),
            "ln2_g": jnp.ones((EMBED_DIM,), jnp.float32),
            "ln2_b": jnp.zeros((EMBED_DIM,), jnp.float32),
            "fc1_w": nrm((EMBED_DIM, HIDDEN)),
            "fc1_b": jnp.zeros((HIDDEN,), jnp.float32),
            "fc2_w": nrm((HIDDEN, EMBED_DIM)),
            "fc2_b": jnp.zeros((EMBED_DIM,), jnp.float32),
            "ls2": LAYER_SCALE_INIT * jnp.ones((EMBED_DIM,), jnp.float32),
        })
    return params


def pack_params(p):
    """One-time repack into the kernel layout: per-block weights stacked along DEPTH,
    biases/gammas pre-shaped to (.., 1, D), softmax scale folded into the q columns,
    CLS/pos fold and attention pad-mask precomputed (hoisted out of the hot path)."""
    def stack(name):
        return jnp.stack([blk[name] for blk in p["blocks"]]).astype(jnp.float32)

    scale = HEAD_DIM ** -0.5
    qkv_w = stack("qkv_w")                                   # (DEPTH, D, 3D)
    qkv_b = stack("qkv_b")                                   # (DEPTH, 3D)
    qkv_w = qkv_w.at[:, :, :EMBED_DIM].multiply(scale)       # fold softmax scale into q
    qkv_b = qkv_b.at[:, :EMBED_DIM].multiply(scale)

    tok_add = jnp.zeros((NPAD, EMBED_DIM), jnp.float32)
    tok_add = tok_add.at[0].set(p["cls_token"][0, 0])
    tok_add = tok_add.at[1:1 + NUM_PATCHES].set(p["pos_embed"][0])
    tok_mask = jnp.zeros((NPAD, 1), jnp.float32).at[1:1 + NUM_PATCHES].set(1.0)
    attn_bias = jnp.where(jnp.arange(NPAD) < NUM_TOKENS, 0.0, NEG_INF)
    attn_bias = attn_bias.astype(jnp.float32).reshape(1, NPAD)

    return {
        "tok_add": tok_add,
        "tok_mask": tok_mask,
        "attn_bias": attn_bias,
        "patch_w": p["patch_w"].reshape(EMBED_DIM, PDIM).T,          # (PDIM, D) == conv flatten .T
        "patch_b": p["patch_b"].reshape(1, EMBED_DIM),
        "qkv_w": qkv_w,
        "qkv_b": qkv_b.reshape(DEPTH, 1, 3 * EMBED_DIM),
        "proj_w": stack("proj_w"),
        "proj_b": stack("proj_b").reshape(DEPTH, 1, EMBED_DIM),
        "ln1_g": stack("ln1_g").reshape(DEPTH, 1, EMBED_DIM),
        "ln1_b": stack("ln1_b").reshape(DEPTH, 1, EMBED_DIM),
        "ls1": stack("ls1").reshape(DEPTH, 1, EMBED_DIM),
        "fc1_w": stack("fc1_w"),
        "fc1_b": stack("fc1_b").reshape(DEPTH, 1, HIDDEN),
        "fc2_w": stack("fc2_w"),
        "fc2_b": stack("fc2_b").reshape(DEPTH, 1, EMBED_DIM),
        "ln2_g": stack("ln2_g").reshape(DEPTH, 1, EMBED_DIM),
        "ln2_b": stack("ln2_b").reshape(DEPTH, 1, EMBED_DIM),
        "ls2": stack("ls2").reshape(DEPTH, 1, EMBED_DIM),
        "norm_g": p["norm_g"].reshape(1, EMBED_DIM),
        "norm_b": p["norm_b"].reshape(1, EMBED_DIM),
    }


# ---------------- forward pass ----------------
def _const_spec(arr):
    # grid-invariant operand: one whole-array block, same block for every grid step
    return pl.BlockSpec(arr.shape, lambda b, _nd=arr.ndim: (0,) * _nd)


def deit_forward(pp, x):
    """x: (B, C, H, W) float32 NCHW -> (B, EMBED_DIM) CLS features (head = Identity)."""
    B, C, H, W = x.shape
    nH, nW = H // PATCH, W // PATCH

    # Patchify (stride-PATCH Conv2d == patchify + matmul); matmul happens inside the kernel.
    patches = x.reshape(B, C, nH, PATCH, nW, PATCH).transpose(0, 2, 4, 1, 3, 5)
    patches = patches.reshape(B, nH * nW, C * PATCH * PATCH)
    # Token layout: row 0 = CLS slot, rows 1..NUM_PATCHES = patches, rest = padding (to 8 rows).
    patches_padded = jnp.zeros((B, NPAD, PDIM), jnp.float32)
    patches_padded = patches_padded.at[:, 1:1 + NUM_PATCHES, :].set(patches)

    const_args = (
        pp["tok_add"], pp["tok_mask"], pp["attn_bias"],
        pp["patch_w"], pp["patch_b"],
        pp["qkv_w"], pp["qkv_b"], pp["proj_w"], pp["proj_b"],
        pp["ln1_g"], pp["ln1_b"], pp["ls1"],
        pp["fc1_w"], pp["fc1_b"], pp["fc2_w"], pp["fc2_b"],
        pp["ln2_g"], pp["ln2_b"], pp["ls2"],
        pp["norm_g"], pp["norm_b"],
    )

    in_specs = [pl.BlockSpec((1, NPAD, PDIM), lambda b: (b, 0, 0))]
    in_specs += [_const_spec(a) for a in const_args]

    out = pl.pallas_call(
        _deit_kernel,
        out_shape=jax.ShapeDtypeStruct((B, 1, EMBED_DIM), jnp.float32),
        grid=(B,),
        in_specs=in_specs,
        out_specs=pl.BlockSpec((1, 1, EMBED_DIM), lambda b: (b, 0, 0)),
        compiler_params=pltpu.CompilerParams(dimension_semantics=("parallel",)),
    )(patches_padded, *const_args)

    return out[:, 0, :]


if __name__ == "__main__":
    key = jax.random.PRNGKey(0)
    kx, kp = jax.random.split(key)
    x = jax.random.normal(kx, (2, IN_CHANS, IMG, IMG), dtype=jnp.float32)
    params = init_params(kp)
    packed = pack_params(params)           # one-time repack, outside the jitted hot path

    feats = jax.jit(deit_forward)(packed, x)
    feats = jax.block_until_ready(feats)

    assert feats.shape == (2, EMBED_DIM), feats.shape
    assert feats.dtype == jnp.float32
    print("KERNEL_OK")
</pallas_src>

<mosaic_0001>
module attributes {stable_mosaic.version = 11 : i64} {
  func.func @_deit_kernel(%arg0: i32, %arg1: memref<1x8x192xf32, #tpu.memory_space<vmem>>, %arg2: memref<8x32xf32, #tpu.memory_space<vmem>>, %arg3: memref<8x1xf32, #tpu.memory_space<vmem>>, %arg4: memref<1x8xf32, #tpu.memory_space<vmem>>, %arg5: memref<192x32xf32, #tpu.memory_space<vmem>>, %arg6: memref<1x32xf32, #tpu.memory_space<vmem>>, %arg7: memref<2x32x96xf32, #tpu.memory_space<vmem>>, %arg8: memref<2x1x96xf32, #tpu.memory_space<vmem>>, %arg9: memref<2x32x32xf32, #tpu.memory_space<vmem>>, %arg10: memref<2x1x32xf32, #tpu.memory_space<vmem>>, %arg11: memref<2x1x32xf32, #tpu.memory_space<vmem>>, %arg12: memref<2x1x32xf32, #tpu.memory_space<vmem>>, %arg13: memref<2x1x32xf32, #tpu.memory_space<vmem>>, %arg14: memref<2x32x128xf32, #tpu.memory_space<vmem>>, %arg15: memref<2x1x128xf32, #tpu.memory_space<vmem>>, %arg16: memref<2x128x32xf32, #tpu.memory_space<vmem>>, %arg17: memref<2x1x32xf32, #tpu.memory_space<vmem>>, %arg18: memref<2x1x32xf32, #tpu.memory_space<vmem>>, %arg19: memref<2x1x32xf32, #tpu.memory_space<vmem>>, %arg20: memref<2x1x32xf32, #tpu.memory_space<vmem>>, %arg21: memref<1x32xf32, #tpu.memory_space<vmem>>, %arg22: memref<1x32xf32, #tpu.memory_space<vmem>>, %arg23: memref<1x1x32xf32, #tpu.memory_space<vmem>>) attributes {dimension_semantics = [#tpu.dimension_semantics<parallel>], iteration_bounds = array<i64: 2>, scalar_prefetch = 0 : i64, scratch_operands = 0 : i64, tpu.core_type = #tpu.core_type<tc>, window_params = [{transform_indices = @transform_0, window_bounds = array<i64: 1, 8, 192>}, {pipeline_mode = #tpu.pipeline_mode<synchronous>, transform_indices = @transform_1, window_bounds = array<i64: 8, 32>}, {pipeline_mode = #tpu.pipeline_mode<synchronous>, transform_indices = @transform_2, window_bounds = array<i64: 8, 1>}, {pipeline_mode = #tpu.pipeline_mode<synchronous>, transform_indices = @transform_3, window_bounds = array<i64: 1, 8>}, {pipeline_mode = #tpu.pipeline_mode<synchronous>, transform_indices = @transform_4, window_bounds = array<i64: 192, 32>}, {pipeline_mode = #tpu.pipeline_mode<synchronous>, transform_indices = @transform_5, window_bounds = array<i64: 1, 32>}, {pipeline_mode = #tpu.pipeline_mode<synchronous>, transform_indices = @transform_6, window_bounds = array<i64: 2, 32, 96>}, {pipeline_mode = #tpu.pipeline_mode<synchronous>, transform_indices = @transform_7, window_bounds = array<i64: 2, 1, 96>}, {pipeline_mode = #tpu.pipeline_mode<synchronous>, transform_indices = @transform_8, window_bounds = array<i64: 2, 32, 32>}, {pipeline_mode = #tpu.pipeline_mode<synchronous>, transform_indices = @transform_9, window_bounds = array<i64: 2, 1, 32>}, {pipeline_mode = #tpu.pipeline_mode<synchronous>, transform_indices = @transform_10, window_bounds = array<i64: 2, 1, 32>}, {pipeline_mode = #tpu.pipeline_mode<synchronous>, transform_indices = @transform_11, window_bounds = array<i64: 2, 1, 32>}, {pipeline_mode = #tpu.pipeline_mode<synchronous>, transform_indices = @transform_12, window_bounds = array<i64: 2, 1, 32>}, {pipeline_mode = #tpu.pipeline_mode<synchronous>, transform_indices = @transform_13, window_bounds = array<i64: 2, 32, 128>}, {pipeline_mode = #tpu.pipeline_mode<synchronous>, transform_indices = @transform_14, window_bounds = array<i64: 2, 1, 128>}, {pipeline_mode = #tpu.pipeline_mode<synchronous>, transform_indices = @transform_15, window_bounds = array<i64: 2, 128, 32>}, {pipeline_mode = #tpu.pipeline_mode<synchronous>, transform_indices = @transform_16, window_bounds = array<i64: 2, 1, 32>}, {pipeline_mode = #tpu.pipeline_mode<synchronous>, transform_indices = @transform_17, window_bounds = array<i64: 2, 1, 32>}, {pipeline_mode = #tpu.pipeline_mode<synchronous>, transform_indices = @transform_18, window_bounds = array<i64: 2, 1, 32>}, {pipeline_mode = #tpu.pipeline_mode<synchronous>, transform_indices = @transform_19, window_bounds = array<i64: 2, 1, 32>}, {pipeline_mode = #tpu.pipeline_mode<synchronous>, transform_indices = @transform_20, window_bounds = array<i64: 1, 32>}, {pipeline_mode = #tpu.pipeline_mode<synchronous>, transform_indices = @transform_21, window_bounds = array<i64: 1, 32>}, {transform_indices = @transform_22, window_bounds = array<i64: 1, 1, 32>}]} {
    %c0 = arith.constant 0 : index
    %c0_0 = arith.constant 0 : index
    %c0_1 = arith.constant 0 : index
    %0 = vector.load %arg1[%c0, %c0_0, %c0_1] : memref<1x8x192xf32, #tpu.memory_space<vmem>>, vector<1x8x192xf32>
    %1 = vector.shape_cast %0 : vector<1x8x192xf32> to vector<8x192xf32>
    %c0_2 = arith.constant 0 : index
    %c0_3 = arith.constant 0 : index
    %2 = vector.load %arg5[%c0_2, %c0_3] : memref<192x32xf32, #tpu.memory_space<vmem>>, vector<192x32xf32>
    %cst = arith.constant dense<0.000000e+00> : vector<8x32xf32>
    %3 = tpu.matmul %1, %2, %cst {dimension_numbers = #tpu.dot_dimension_numbers<[1], [0], [0], [1], [0, 0, 1, 1], [], []>} : vector<8x192xf32>, vector<192x32xf32>, vector<8x32xf32> -> vector<8x32xf32>
    %c0_4 = arith.constant 0 : index
    %c0_5 = arith.constant 0 : index
    %4 = vector.load %arg6[%c0_4, %c0_5] : memref<1x32xf32, #tpu.memory_space<vmem>>, vector<1x32xf32>
    %5 = vector.broadcast %4 : vector<1x32xf32> to vector<8x32xf32>
    %6 = arith.addf %3, %5 : vector<8x32xf32>
    %c0_6 = arith.constant 0 : index
    %c0_7 = arith.constant 0 : index
    %7 = vector.load %arg3[%c0_6, %c0_7] : memref<8x1xf32, #tpu.memory_space<vmem>>, vector<8x1xf32>
    %8 = vector.broadcast %7 : vector<8x1xf32> to vector<8x32xf32>
    %9 = arith.mulf %6, %8 : vector<8x32xf32>
    %c0_8 = arith.constant 0 : index
    %c0_9 = arith.constant 0 : index
    %10 = vector.load %arg2[%c0_8, %c0_9] : memref<8x32xf32, #tpu.memory_space<vmem>>, vector<8x32xf32>
    %11 = arith.addf %9, %10 : vector<8x32xf32>
    %c0_10 = arith.constant 0 : index
    %c0_11 = arith.constant 0 : index
    %12 = vector.load %arg4[%c0_10, %c0_11] : memref<1x8xf32, #tpu.memory_space<vmem>>, vector<1x8xf32>
    %c0_12 = arith.constant 0 : index
    %c0_13 = arith.constant 0 : index
    %c0_14 = arith.constant 0 : index
    %13 = vector.load %arg11[%c0_12, %c0_13, %c0_14] : memref<2x1x32xf32, #tpu.memory_space<vmem>>, vector<1x1x32xf32>
    %14 = vector.shape_cast %13 : vector<1x1x32xf32> to vector<1x32xf32>
    %c0_15 = arith.constant 0 : index
    %c0_16 = arith.constant 0 : index
    %c0_17 = arith.constant 0 : index
    %15 = vector.load %arg12[%c0_15, %c0_16, %c0_17] : memref<2x1x32xf32, #tpu.memory_space<vmem>>, vector<1x1x32xf32>
    %16 = vector.shape_cast %15 : vector<1x1x32xf32> to vector<1x32xf32>
    %cst_18 = arith.constant dense<0.000000e+00> : vector<8xf32>
    %17 = vector.multi_reduction <add>, %11, %cst_18 [1] : vector<8x32xf32> to vector<8xf32>
    %18 = vector.shape_cast %17 : vector<8xf32> to vector<8x1xf32>
    %cst_19 = arith.constant 3.200000e+01 : f32
    %19 = vector.broadcast %cst_19 : f32 to vector<8x1xf32>
    %20 = arith.divf %18, %19 : vector<8x1xf32>
    %21 = vector.broadcast %20 : vector<8x1xf32> to vector<8x32xf32>
    %22 = arith.subf %11, %21 : vector<8x32xf32>
    %23 = arith.mulf %22, %22 : vector<8x32xf32>
    %cst_20 = arith.constant dense<0.000000e+00> : vector<8xf32>
    %24 = vector.multi_reduction <add>, %23, %cst_20 [1] : vector<8x32xf32> to vector<8xf32>
    %25 = vector.shape_cast %24 : vector<8xf32> to vector<8x1xf32>
    %cst_21 = arith.constant 3.200000e+01 : f32
    %26 = vector.broadcast %cst_21 : f32 to vector<8x1xf32>
    %27 = arith.divf %25, %26 : vector<8x1xf32>
    %28 = vector.broadcast %20 : vector<8x1xf32> to vector<8x32xf32>
    %29 = arith.subf %11, %28 : vector<8x32xf32>
    %cst_22 = arith.constant 9.99999997E-7 : f32
    %30 = vector.broadcast %cst_22 : f32 to vector<8x1xf32>
    %31 = arith.addf %27, %30 : vector<8x1xf32>
    %32 = math.rsqrt %31 : vector<8x1xf32>
    %33 = vector.broadcast %32 : vector<8x1xf32> to vector<8x32xf32>
    %34 = arith.mulf %29, %33 : vector<8x32xf32>
    %35 = vector.broadcast %14 : vector<1x32xf32> to vector<8x32xf32>
    %36 = arith.mulf %34, %35 : vector<8x32xf32>
    %37 = vector.broadcast %16 : vector<1x32xf32> to vector<8x32xf32>
    %38 = arith.addf %36, %37 : vector<8x32xf32>
    %c0_23 = arith.constant 0 : index
    %c0_24 = arith.constant 0 : index
    %c0_25 = arith.constant 0 : index
    %39 = vector.load %arg7[%c0_23, %c0_24, %c0_25] : memref<2x32x96xf32, #tpu.memory_space<vmem>>, vector<1x32x96xf32>
    %40 = vector.shape_cast %39 : vector<1x32x96xf32> to vector<32x96xf32>
    %cst_26 = arith.constant dense<0.000000e+00> : vector<8x96xf32>
    %41 = tpu.matmul %38, %40, %cst_26 {dimension_numbers = #tpu.dot_dimension_numbers<[1], [0], [0], [1], [0, 0, 1, 1], [], []>} : vector<8x32xf32>, vector<32x96xf32>, vector<8x96xf32> -> vector<8x96xf32>
    %c0_27 = arith.constant 0 : index
    %c0_28 = arith.constant 0 : index
    %c0_29 = arith.constant 0 : index
    %42 = vector.load %arg8[%c0_27, %c0_28, %c0_29] : memref<2x1x96xf32, #tpu.memory_space<vmem>>, vector<1x1x96xf32>
    %43 = vector.shape_cast %42 : vector<1x1x96xf32> to vector<1x96xf32>
    %44 = vector.broadcast %43 : vector<1x96xf32> to vector<8x96xf32>
    %45 = arith.addf %41, %44 : vector<8x96xf32>
    %46 = vector.extract_strided_slice %45 {offsets = [0, 0], sizes = [8, 8], strides = [1, 1]} : vector<8x96xf32> to vector<8x8xf32>
    %47 = vector.extract_strided_slice %45 {offsets = [0, 32], sizes = [8, 8], strides = [1, 1]} : vector<8x96xf32> to vector<8x8xf32>
    %48 = vector.extract_strided_slice %45 {offsets = [0, 64], sizes = [8, 8], strides = [1, 1]} : vector<8x96xf32> to vector<8x8xf32>
    %cst_30 = arith.constant dense<0.000000e+00> : vector<8x8xf32>
    %49 = tpu.matmul %46, %47, %cst_30 {dimension_numbers = #tpu.dot_dimension_numbers<[1], [1], [0], [0], [0, 0, 1, 0], [], []>} : vector<8x8xf32>, vector<8x8xf32>, vector<8x8xf32> -> vector<8x8xf32>
    %50 = vector.broadcast %12 : vector<1x8xf32> to vector<8x8xf32>
    %51 = arith.addf %49, %50 : vector<8x8xf32>
    %cst_31 = arith.constant dense<0xFF800000> : vector<8xf32>
    %52 = vector.multi_reduction <maximumf>, %51, %cst_31 [1] : vector<8x8xf32> to vector<8xf32>
    %53 = vector.shape_cast %52 : vector<8xf32> to vector<8x1xf32>
    %54 = vector.broadcast %53 : vector<8x1xf32> to vector<8x8xf32>
    %55 = arith.subf %51, %54 : vector<8x8xf32>
    %56 = math.exp %55 : vector<8x8xf32>
    %cst_32 = arith.constant dense<0.000000e+00> : vector<8xf32>
    %57 = vector.multi_reduction <add>, %56, %cst_32 [1] : vector<8x8xf32> to vector<8xf32>
    %58 = vector.shape_cast %57 : vector<8xf32> to vector<8x1xf32>
    %59 = tpu.reciprocal %58 {approx = true} : vector<8x1xf32> -> vector<8x1xf32>
    %60 = vector.broadcast %59 : vector<8x1xf32> to vector<8x8xf32>
    %61 = arith.mulf %56, %60 : vector<8x8xf32>
    %cst_33 = arith.constant dense<0.000000e+00> : vector<8x8xf32>
    %62 = tpu.matmul %61, %48, %cst_33 {dimension_numbers = #tpu.dot_dimension_numbers<[1], [0], [0], [1], [0, 0, 1, 1], [], []>} : vector<8x8xf32>, vector<8x8xf32>, vector<8x8xf32> -> vector<8x8xf32>
    %63 = vector.extract_strided_slice %45 {offsets = [0, 8], sizes = [8, 8], strides = [1, 1]} : vector<8x96xf32> to vector<8x8xf32>
    %64 = vector.extract_strided_slice %45 {offsets = [0, 40], sizes = [8, 8], strides = [1, 1]} : vector<8x96xf32> to vector<8x8xf32>
    %65 = vector.extract_strided_slice %45 {offsets = [0, 72], sizes = [8, 8], strides = [1, 1]} : vector<8x96xf32> to vector<8x8xf32>
    %cst_34 = arith.constant dense<0.000000e+00> : vector<8x8xf32>
    %66 = tpu.matmul %63, %64, %cst_34 {dimension_numbers = #tpu.dot_dimension_numbers<[1], [1], [0], [0], [0, 0, 1, 0], [], []>} : vector<8x8xf32>, vector<8x8xf32>, vector<8x8xf32> -> vector<8x8xf32>
    %67 = vector.broadcast %12 : vector<1x8xf32> to vector<8x8xf32>
    %68 = arith.addf %66, %67 : vector<8x8xf32>
    %cst_35 = arith.constant dense<0xFF800000> : vector<8xf32>
    %69 = vector.multi_reduction <maximumf>, %68, %cst_35 [1] : vector<8x8xf32> to vector<8xf32>
    %70 = vector.shape_cast %69 : vector<8xf32> to vector<8x1xf32>
    %71 = vector.broadcast %70 : vector<8x1xf32> to vector<8x8xf32>
    %72 = arith.subf %68, %71 : vector<8x8xf32>
    %73 = math.exp %72 : vector<8x8xf32>
    %cst_36 = arith.constant dense<0.000000e+00> : vector<8xf32>
    %74 = vector.multi_reduction <add>, %73, %cst_36 [1] : vector<8x8xf32> to vector<8xf32>
    %75 = vector.shape_cast %74 : vector<8xf32> to vector<8x1xf32>
    %76 = tpu.reciprocal %75 {approx = true} : vector<8x1xf32> -> vector<8x1xf32>
    %77 = vector.broadcast %76 : vector<8x1xf32> to vector<8x8xf32>
    %78 = arith.mulf %73, %77 : vector<8x8xf32>
    %cst_37 = arith.constant dense<0.000000e+00> : vector<8x8xf32>
    %79 = tpu.matmul %78, %65, %cst_37 {dimension_numbers = #tpu.dot_dimension_numbers<[1], [0], [0], [1], [0, 0, 1, 1], [], []>} : vector<8x8xf32>, vector<8x8xf32>, vector<8x8xf32> -> vector<8x8xf32>
    %80 = vector.extract_strided_slice %45 {offsets = [0, 16], sizes = [8, 8], strides = [1, 1]} : vector<8x96xf32> to vector<8x8xf32>
    %81 = vector.extract_strided_slice %45 {offsets = [0, 48], sizes = [8, 8], strides = [1, 1]} : vector<8x96xf32> to vector<8x8xf32>
    %82 = vector.extract_strided_slice %45 {offsets = [0, 80], sizes = [8, 8], strides = [1, 1]} : vector<8x96xf32> to vector<8x8xf32>
    %cst_38 = arith.constant dense<0.000000e+00> : vector<8x8xf32>
    %83 = tpu.matmul %80, %81, %cst_38 {dimension_numbers = #tpu.dot_dimension_numbers<[1], [1], [0], [0], [0, 0, 1, 0], [], []>} : vector<8x8xf32>, vector<8x8xf32>, vector<8x8xf32> -> vector<8x8xf32>
    %84 = vector.broadcast %12 : vector<1x8xf32> to vector<8x8xf32>
    %85 = arith.addf %83, %84 : vector<8x8xf32>
    %cst_39 = arith.constant dense<0xFF800000> : vector<8xf32>
    %86 = vector.multi_reduction <maximumf>, %85, %cst_39 [1] : vector<8x8xf32> to vector<8xf32>
    %87 = vector.shape_cast %86 : vector<8xf32> to vector<8x1xf32>
    %88 = vector.broadcast %87 : vector<8x1xf32> to vector<8x8xf32>
    %89 = arith.subf %85, %88 : vector<8x8xf32>
    %90 = math.exp %89 : vector<8x8xf32>
    %cst_40 = arith.constant dense<0.000000e+00> : vector<8xf32>
    %91 = vector.multi_reduction <add>, %90, %cst_40 [1] : vector<8x8xf32> to vector<8xf32>
    %92 = vector.shape_cast %91 : vector<8xf32> to vector<8x1xf32>
    %93 = tpu.reciprocal %92 {approx = true} : vector<8x1xf32> -> vector<8x1xf32>
    %94 = vector.broadcast %93 : vector<8x1xf32> to vector<8x8xf32>
    %95 = arith.mulf %90, %94 : vector<8x8xf32>
    %cst_41 = arith.constant dense<0.000000e+00> : vector<8x8xf32>
    %96 = tpu.matmul %95, %82, %cst_41 {dimension_numbers = #tpu.dot_dimension_numbers<[1], [0], [0], [1], [0, 0, 1, 1], [], []>} : vector<8x8xf32>, vector<8x8xf32>, vector<8x8xf32> -> vector<8x8xf32>
    %97 = vector.extract_strided_slice %45 {offsets = [0, 24], sizes = [8, 8], strides = [1, 1]} : vector<8x96xf32> to vector<8x8xf32>
    %98 = vector.extract_strided_slice %45 {offsets = [0, 56], sizes = [8, 8], strides = [1, 1]} : vector<8x96xf32> to vector<8x8xf32>
    %99 = vector.extract_strided_slice %45 {offsets = [0, 88], sizes = [8, 8], strides = [1, 1]} : vector<8x96xf32> to vector<8x8xf32>
    %cst_42 = arith.constant dense<0.000000e+00> : vector<8x8xf32>
    %100 = tpu.matmul %97, %98, %cst_42 {dimension_numbers = #tpu.dot_dimension_numbers<[1], [1], [0], [0], [0, 0, 1, 0], [], []>} : vector<8x8xf32>, vector<8x8xf32>, vector<8x8xf32> -> vector<8x8xf32>
    %101 = vector.broadcast %12 : vector<1x8xf32> to vector<8x8xf32>
    %102 = arith.addf %100, %101 : vector<8x8xf32>
    %cst_43 = arith.constant dense<0xFF800000> : vector<8xf32>
    %103 = vector.multi_reduction <maximumf>, %102, %cst_43 [1] : vector<8x8xf32> to vector<8xf32>
    %104 = vector.shape_cast %103 : vector<8xf32> to vector<8x1xf32>
    %105 = vector.broadcast %104 : vector<8x1xf32> to vector<8x8xf32>
    %106 = arith.subf %102, %105 : vector<8x8xf32>
    %107 = math.exp %106 : vector<8x8xf32>
    %cst_44 = arith.constant dense<0.000000e+00> : vector<8xf32>
    %108 = vector.multi_reduction <add>, %107, %cst_44 [1] : vector<8x8xf32> to vector<8xf32>
    %109 = vector.shape_cast %108 : vector<8xf32> to vector<8x1xf32>
    %110 = tpu.reciprocal %109 {approx = true} : vector<8x1xf32> -> vector<8x1xf32>
    %111 = vector.broadcast %110 : vector<8x1xf32> to vector<8x8xf32>
    %112 = arith.mulf %107, %111 : vector<8x8xf32>
    %cst_45 = arith.constant dense<0.000000e+00> : vector<8x8xf32>
    %113 = tpu.matmul %112, %99, %cst_45 {dimension_numbers = #tpu.dot_dimension_numbers<[1], [0], [0], [1], [0, 0, 1, 1], [], []>} : vector<8x8xf32>, vector<8x8xf32>, vector<8x8xf32> -> vector<8x8xf32>
    %114 = tpu.concatenate %62, %79, %96, %113 in 1 : vector<8x8xf32>, vector<8x8xf32>, vector<8x8xf32>, vector<8x8xf32> -> vector<8x32xf32>
    %c0_46 = arith.constant 0 : index
    %c0_47 = arith.constant 0 : index
    %c0_48 = arith.constant 0 : index
    %115 = vector.load %arg9[%c0_46, %c0_47, %c0_48] : memref<2x32x32xf32, #tpu.memory_space<vmem>>, vector<1x32x32xf32>
    %116 = vector.shape_cast %115 : vector<1x32x32xf32> to vector<32x32xf32>
    %cst_49 = arith.constant dense<0.000000e+00> : vector<8x32xf32>
    %117 = tpu.matmul %114, %116, %cst_49 {dimension_numbers = #tpu.dot_dimension_numbers<[1], [0], [0], [1], [0, 0, 1, 1], [], []>} : vector<8x32xf32>, vector<32x32xf32>, vector<8x32xf32> -> vector<8x32xf32>
    %c0_50 = arith.constant 0 : index
    %c0_51 = arith.constant 0 : index
    %c0_52 = arith.constant 0 : index
    %118 = vector.load %arg10[%c0_50, %c0_51, %c0_52] : memref<2x1x32xf32, #tpu.memory_space<vmem>>, vector<1x1x32xf32>
    %119 = vector.shape_cast %118 : vector<1x1x32xf32> to vector<1x32xf32>
    %120 = vector.broadcast %119 : vector<1x32xf32> to vector<8x32xf32>
    %121 = arith.addf %117, %120 : vector<8x32xf32>
    %c0_53 = arith.constant 0 : index
    %c0_54 = arith.constant 0 : index
    %c0_55 = arith.constant 0 : index
    %122 = vector.load %arg13[%c0_53, %c0_54, %c0_55] : memref<2x1x32xf32, #tpu.memory_space<vmem>>, vector<1x1x32xf32>
    %123 = vector.shape_cast %122 : vector<1x1x32xf32> to vector<1x32xf32>
    %124 = vector.broadcast %123 : vector<1x32xf32> to vector<8x32xf32>
    %125 = arith.mulf %124, %121 : vector<8x32xf32>
    %126 = arith.addf %11, %125 : vector<8x32xf32>
    %c0_56 = arith.constant 0 : index
    %c0_57 = arith.constant 0 : index
    %c0_58 = arith.constant 0 : index
    %127 = vector.load %arg18[%c0_56, %c0_57, %c0_58] : memref<2x1x32xf32, #tpu.memory_space<vmem>>, vector<1x1x32xf32>
    %128 = vector.shape_cast %127 : vector<1x1x32xf32> to vector<1x32xf32>
    %c0_59 = arith.constant 0 : index
    %c0_60 = arith.constant 0 : index
    %c0_61 = arith.constant 0 : index
    %129 = vector.load %arg19[%c0_59, %c0_60, %c0_61] : memref<2x1x32xf32, #tpu.memory_space<vmem>>, vector<1x1x32xf32>
    %130 = vector.shape_cast %129 : vector<1x1x32xf32> to vector<1x32xf32>
    %cst_62 = arith.constant dense<0.000000e+00> : vector<8xf32>
    %131 = vector.multi_reduction <add>, %126, %cst_62 [1] : vector<8x32xf32> to vector<8xf32>
    %132 = vector.shape_cast %131 : vector<8xf32> to vector<8x1xf32>
    %cst_63 = arith.constant 3.200000e+01 : f32
    %133 = vector.broadcast %cst_63 : f32 to vector<8x1xf32>
    %134 = arith.divf %132, %133 : vector<8x1xf32>
    %135 = vector.broadcast %134 : vector<8x1xf32> to vector<8x32xf32>
    %136 = arith.subf %126, %135 : vector<8x32xf32>
    %137 = arith.mulf %136, %136 : vector<8x32xf32>
    %cst_64 = arith.constant dense<0.000000e+00> : vector<8xf32>
    %138 = vector.multi_reduction <add>, %137, %cst_64 [1] : vector<8x32xf32> to vector<8xf32>
    %139 = vector.shape_cast %138 : vector<8xf32> to vector<8x1xf32>
    %cst_65 = arith.constant 3.200000e+01 : f32
    %140 = vector.broadcast %cst_65 : f32 to vector<8x1xf32>
    %141 = arith.divf %139, %140 : vector<8x1xf32>
    %142 = vector.broadcast %134 : vector<8x1xf32> to vector<8x32xf32>
    %143 = arith.subf %126, %142 : vector<8x32xf32>
    %cst_66 = arith.constant 9.99999997E-7 : f32
    %144 = vector.broadcast %cst_66 : f32 to vector<8x1xf32>
    %145 = arith.addf %141, %144 : vector<8x1xf32>
    %146 = math.rsqrt %145 : vector<8x1xf32>
    %147 = vector.broadcast %146 : vector<8x1xf32> to vector<8x32xf32>
    %148 = arith.mulf %143, %147 : vector<8x32xf32>
    %149 = vector.broadcast %128 : vector<1x32xf32> to vector<8x32xf32>
    %150 = arith.mulf %148, %149 : vector<8x32xf32>
    %151 = vector.broadcast %130 : vector<1x32xf32> to vector<8x32xf32>
    %152 = arith.addf %150, %151 : vector<8x32xf32>
    %c0_67 = arith.constant 0 : index
    %c0_68 = arith.constant 0 : index
    %c0_69 = arith.constant 0 : index
    %153 = vector.load %arg14[%c0_67, %c0_68, %c0_69] : memref<2x32x128xf32, #tpu.memory_space<vmem>>, vector<1x32x128xf32>
    %154 = vector.shape_cast %153 : vector<1x32x128xf32> to vector<32x128xf32>
    %cst_70 = arith.constant dense<0.000000e+00> : vector<8x128xf32>
    %155 = tpu.matmul %152, %154, %cst_70 {dimension_numbers = #tpu.dot_dimension_numbers<[1], [0], [0], [1], [0, 0, 1, 1], [], []>} : vector<8x32xf32>, vector<32x128xf32>, vector<8x128xf32> -> vector<8x128xf32>
    %c0_71 = arith.constant 0 : index
    %c0_72 = arith.constant 0 : index
    %c0_73 = arith.constant 0 : index
    %156 = vector.load %arg15[%c0_71, %c0_72, %c0_73] : memref<2x1x128xf32, #tpu.memory_space<vmem>>, vector<1x1x128xf32>
    %157 = vector.shape_cast %156 : vector<1x1x128xf32> to vector<1x128xf32>
    %158 = vector.broadcast %157 : vector<1x128xf32> to vector<8x128xf32>
    %159 = arith.addf %155, %158 : vector<8x128xf32>
    %cst_74 = arith.constant 5.000000e-01 : f32
    %160 = vector.broadcast %cst_74 : f32 to vector<8x128xf32>
    %161 = arith.mulf %160, %159 : vector<8x128xf32>
    %cst_75 = arith.constant 0.707106769 : f32
    %162 = vector.broadcast %cst_75 : f32 to vector<8x128xf32>
    %163 = arith.mulf %159, %162 : vector<8x128xf32>
    %164 = math.erf %163 : vector<8x128xf32>
    %cst_76 = arith.constant 1.000000e+00 : f32
    %165 = vector.broadcast %cst_76 : f32 to vector<8x128xf32>
    %166 = arith.addf %165, %164 : vector<8x128xf32>
    %167 = arith.mulf %161, %166 : vector<8x128xf32>
    %c0_77 = arith.constant 0 : index
    %c0_78 = arith.constant 0 : index
    %c0_79 = arith.constant 0 : index
    %168 = vector.load %arg16[%c0_77, %c0_78, %c0_79] : memref<2x128x32xf32, #tpu.memory_space<vmem>>, vector<1x128x32xf32>
    %169 = vector.shape_cast %168 : vector<1x128x32xf32> to vector<128x32xf32>
    %cst_80 = arith.constant dense<0.000000e+00> : vector<8x32xf32>
    %170 = tpu.matmul %167, %169, %cst_80 {dimension_numbers = #tpu.dot_dimension_numbers<[1], [0], [0], [1], [0, 0, 1, 1], [], []>} : vector<8x128xf32>, vector<128x32xf32>, vector<8x32xf32> -> vector<8x32xf32>
    %c0_81 = arith.constant 0 : index
    %c0_82 = arith.constant 0 : index
    %c0_83 = arith.constant 0 : index
    %171 = vector.load %arg17[%c0_81, %c0_82, %c0_83] : memref<2x1x32xf32, #tpu.memory_space<vmem>>, vector<1x1x32xf32>
    %172 = vector.shape_cast %171 : vector<1x1x32xf32> to vector<1x32xf32>
    %173 = vector.broadcast %172 : vector<1x32xf32> to vector<8x32xf32>
    %174 = arith.addf %170, %173 : vector<8x32xf32>
    %c0_84 = arith.constant 0 : index
    %c0_85 = arith.constant 0 : index
    %c0_86 = arith.constant 0 : index
    %175 = vector.load %arg20[%c0_84, %c0_85, %c0_86] : memref<2x1x32xf32, #tpu.memory_space<vmem>>, vector<1x1x32xf32>
    %176 = vector.shape_cast %175 : vector<1x1x32xf32> to vector<1x32xf32>
    %177 = vector.broadcast %176 : vector<1x32xf32> to vector<8x32xf32>
    %178 = arith.mulf %177, %174 : vector<8x32xf32>
    %179 = arith.addf %126, %178 : vector<8x32xf32>
    %c1 = arith.constant 1 : index
    %c0_87 = arith.constant 0 : index
    %c0_88 = arith.constant 0 : index
    %180 = vector.load %arg11[%c1, %c0_87, %c0_88] : memref<2x1x32xf32, #tpu.memory_space<vmem>>, vector<1x1x32xf32>
    %181 = vector.shape_cast %180 : vector<1x1x32xf32> to vector<1x32xf32>
    %c1_89 = arith.constant 1 : index
    %c0_90 = arith.constant 0 : index
    %c0_91 = arith.constant 0 : index
    %182 = vector.load %arg12[%c1_89, %c0_90, %c0_91] : memref<2x1x32xf32, #tpu.memory_space<vmem>>, vector<1x1x32xf32>
    %183 = vector.shape_cast %182 : vector<1x1x32xf32> to vector<1x32xf32>
    %cst_92 = arith.constant dense<0.000000e+00> : vector<8xf32>
    %184 = vector.multi_reduction <add>, %179, %cst_92 [1] : vector<8x32xf32> to vector<8xf32>
    %185 = vector.shape_cast %184 : vector<8xf32> to vector<8x1xf32>
    %cst_93 = arith.constant 3.200000e+01 : f32
    %186 = vector.broadcast %cst_93 : f32 to vector<8x1xf32>
    %187 = arith.divf %185, %186 : vector<8x1xf32>
    %188 = vector.broadcast %187 : vector<8x1xf32> to vector<8x32xf32>
    %189 = arith.subf %179, %188 : vector<8x32xf32>
    %190 = arith.mulf %189, %189 : vector<8x32xf32>
    %cst_94 = arith.constant dense<0.000000e+00> : vector<8xf32>
    %191 = vector.multi_reduction <add>, %190, %cst_94 [1] : vector<8x32xf32> to vector<8xf32>
    %192 = vector.shape_cast %191 : vector<8xf32> to vector<8x1xf32>
    %cst_95 = arith.constant 3.200000e+01 : f32
    %193 = vector.broadcast %cst_95 : f32 to vector<8x1xf32>
    %194 = arith.divf %192, %193 : vector<8x1xf32>
    %195 = vector.broadcast %187 : vector<8x1xf32> to vector<8x32xf32>
    %196 = arith.subf %179, %195 : vector<8x32xf32>
    %cst_96 = arith.constant 9.99999997E-7 : f32
    %197 = vector.broadcast %cst_96 : f32 to vector<8x1xf32>
    %198 = arith.addf %194, %197 : vector<8x1xf32>
    %199 = math.rsqrt %198 : vector<8x1xf32>
    %200 = vector.broadcast %199 : vector<8x1xf32> to vector<8x32xf32>
    %201 = arith.mulf %196, %200 : vector<8x32xf32>
    %202 = vector.broadcast %181 : vector<1x32xf32> to vector<8x32xf32>
    %203 = arith.mulf %201, %202 : vector<8x32xf32>
    %204 = vector.broadcast %183 : vector<1x32xf32> to vector<8x32xf32>
    %205 = arith.addf %203, %204 : vector<8x32xf32>
    %c1_97 = arith.constant 1 : index
    %c0_98 = arith.constant 0 : index
    %c0_99 = arith.constant 0 : index
    %206 = vector.load %arg7[%c1_97, %c0_98, %c0_99] : memref<2x32x96xf32, #tpu.memory_space<vmem>>, vector<1x32x96xf32>
    %207 = vector.shape_cast %206 : vector<1x32x96xf32> to vector<32x96xf32>
    %cst_100 = arith.constant dense<0.000000e+00> : vector<8x96xf32>
    %208 = tpu.matmul %205, %207, %cst_100 {dimension_numbers = #tpu.dot_dimension_numbers<[1], [0], [0], [1], [0, 0, 1, 1], [], []>} : vector<8x32xf32>, vector<32x96xf32>, vector<8x96xf32> -> vector<8x96xf32>
    %c1_101 = arith.constant 1 : index
    %c0_102 = arith.constant 0 : index
    %c0_103 = arith.constant 0 : index
    %209 = vector.load %arg8[%c1_101, %c0_102, %c0_103] : memref<2x1x96xf32, #tpu.memory_space<vmem>>, vector<1x1x96xf32>
    %210 = vector.shape_cast %209 : vector<1x1x96xf32> to vector<1x96xf32>
    %211 = vector.broadcast %210 : vector<1x96xf32> to vector<8x96xf32>
    %212 = arith.addf %208, %211 : vector<8x96xf32>
    %213 = vector.extract_strided_slice %212 {offsets = [0, 0], sizes = [8, 8], strides = [1, 1]} : vector<8x96xf32> to vector<8x8xf32>
    %214 = vector.extract_strided_slice %212 {offsets = [0, 32], sizes = [8, 8], strides = [1, 1]} : vector<8x96xf32> to vector<8x8xf32>
    %215 = vector.extract_strided_slice %212 {offsets = [0, 64], sizes = [8, 8], strides = [1, 1]} : vector<8x96xf32> to vector<8x8xf32>
    %cst_104 = arith.constant dense<0.000000e+00> : vector<8x8xf32>
    %216 = tpu.matmul %213, %214, %cst_104 {dimension_numbers = #tpu.dot_dimension_numbers<[1], [1], [0], [0], [0, 0, 1, 0], [], []>} : vector<8x8xf32>, vector<8x8xf32>, vector<8x8xf32> -> vector<8x8xf32>
    %217 = vector.broadcast %12 : vector<1x8xf32> to vector<8x8xf32>
    %218 = arith.addf %216, %217 : vector<8x8xf32>
    %cst_105 = arith.constant dense<0xFF800000> : vector<8xf32>
    %219 = vector.multi_reduction <maximumf>, %218, %cst_105 [1] : vector<8x8xf32> to vector<8xf32>
    %220 = vector.shape_cast %219 : vector<8xf32> to vector<8x1xf32>
    %221 = vector.broadcast %220 : vector<8x1xf32> to vector<8x8xf32>
    %222 = arith.subf %218, %221 : vector<8x8xf32>
    %223 = math.exp %222 : vector<8x8xf32>
    %cst_106 = arith.constant dense<0.000000e+00> : vector<8xf32>
    %224 = vector.multi_reduction <add>, %223, %cst_106 [1] : vector<8x8xf32> to vector<8xf32>
    %225 = vector.shape_cast %224 : vector<8xf32> to vector<8x1xf32>
    %226 = tpu.reciprocal %225 {approx = true} : vector<8x1xf32> -> vector<8x1xf32>
    %227 = vector.broadcast %226 : vector<8x1xf32> to vector<8x8xf32>
    %228 = arith.mulf %223, %227 : vector<8x8xf32>
    %cst_107 = arith.constant dense<0.000000e+00> : vector<8x8xf32>
    %229 = tpu.matmul %228, %215, %cst_107 {dimension_numbers = #tpu.dot_dimension_numbers<[1], [0], [0], [1], [0, 0, 1, 1], [], []>} : vector<8x8xf32>, vector<8x8xf32>, vector<8x8xf32> -> vector<8x8xf32>
    %230 = vector.extract_strided_slice %212 {offsets = [0, 8], sizes = [8, 8], strides = [1, 1]} : vector<8x96xf32> to vector<8x8xf32>
    %231 = vector.extract_strided_slice %212 {offsets = [0, 40], sizes = [8, 8], strides = [1, 1]} : vector<8x96xf32> to vector<8x8xf32>
    %232 = vector.extract_strided_slice %212 {offsets = [0, 72], sizes = [8, 8], strides = [1, 1]} : vector<8x96xf32> to vector<8x8xf32>
    %cst_108 = arith.constant dense<0.000000e+00> : vector<8x8xf32>
    %233 = tpu.matmul %230, %231, %cst_108 {dimension_numbers = #tpu.dot_dimension_numbers<[1], [1], [0], [0], [0, 0, 1, 0], [], []>} : vector<8x8xf32>, vector<8x8xf32>, vector<8x8xf32> -> vector<8x8xf32>
    %234 = vector.broadcast %12 : vector<1x8xf32> to vector<8x8xf32>
    %235 = arith.addf %233, %234 : vector<8x8xf32>
    %cst_109 = arith.constant dense<0xFF800000> : vector<8xf32>
    %236 = vector.multi_reduction <maximumf>, %235, %cst_109 [1] : vector<8x8xf32> to vector<8xf32>
    %237 = vector.shape_cast %236 : vector<8xf32> to vector<8x1xf32>
    %238 = vector.broadcast %237 : vector<8x1xf32> to vector<8x8xf32>
    %239 = arith.subf %235, %238 : vector<8x8xf32>
    %240 = math.exp %239 : vector<8x8xf32>
    %cst_110 = arith.constant dense<0.000000e+00> : vector<8xf32>
    %241 = vector.multi_reduction <add>, %240, %cst_110 [1] : vector<8x8xf32> to vector<8xf32>
    %242 = vector.shape_cast %241 : vector<8xf32> to vector<8x1xf32>
    %243 = tpu.reciprocal %242 {approx = true} : vector<8x1xf32> -> vector<8x1xf32>
    %244 = vector.broadcast %243 : vector<8x1xf32> to vector<8x8xf32>
    %245 = arith.mulf %240, %244 : vector<8x8xf32>
    %cst_111 = arith.constant dense<0.000000e+00> : vector<8x8xf32>
    %246 = tpu.matmul %245, %232, %cst_111 {dimension_numbers = #tpu.dot_dimension_numbers<[1], [0], [0], [1], [0, 0, 1, 1], [], []>} : vector<8x8xf32>, vector<8x8xf32>, vector<8x8xf32> -> vector<8x8xf32>
    %247 = vector.extract_strided_slice %212 {offsets = [0, 16], sizes = [8, 8], strides = [1, 1]} : vector<8x96xf32> to vector<8x8xf32>
    %248 = vector.extract_strided_slice %212 {offsets = [0, 48], sizes = [8, 8], strides = [1, 1]} : vector<8x96xf32> to vector<8x8xf32>
    %249 = vector.extract_strided_slice %212 {offsets = [0, 80], sizes = [8, 8], strides = [1, 1]} : vector<8x96xf32> to vector<8x8xf32>
    %cst_112 = arith.constant dense<0.000000e+00> : vector<8x8xf32>
    %250 = tpu.matmul %247, %248, %cst_112 {dimension_numbers = #tpu.dot_dimension_numbers<[1], [1], [0], [0], [0, 0, 1, 0], [], []>} : vector<8x8xf32>, vector<8x8xf32>, vector<8x8xf32> -> vector<8x8xf32>
    %251 = vector.broadcast %12 : vector<1x8xf32> to vector<8x8xf32>
    %252 = arith.addf %250, %251 : vector<8x8xf32>
    %cst_113 = arith.constant dense<0xFF800000> : vector<8xf32>
    %253 = vector.multi_reduction <maximumf>, %252, %cst_113 [1] : vector<8x8xf32> to vector<8xf32>
    %254 = vector.shape_cast %253 : vector<8xf32> to vector<8x1xf32>
    %255 = vector.broadcast %254 : vector<8x1xf32> to vector<8x8xf32>
    %256 = arith.subf %252, %255 : vector<8x8xf32>
    %257 = math.exp %256 : vector<8x8xf32>
    %cst_114 = arith.constant dense<0.000000e+00> : vector<8xf32>
    %258 = vector.multi_reduction <add>, %257, %cst_114 [1] : vector<8x8xf32> to vector<8xf32>
    %259 = vector.shape_cast %258 : vector<8xf32> to vector<8x1xf32>
    %260 = tpu.reciprocal %259 {approx = true} : vector<8x1xf32> -> vector<8x1xf32>
    %261 = vector.broadcast %260 : vector<8x1xf32> to vector<8x8xf32>
    %262 = arith.mulf %257, %261 : vector<8x8xf32>
    %cst_115 = arith.constant dense<0.000000e+00> : vector<8x8xf32>
    %263 = tpu.matmul %262, %249, %cst_115 {dimension_numbers = #tpu.dot_dimension_numbers<[1], [0], [0], [1], [0, 0, 1, 1], [], []>} : vector<8x8xf32>, vector<8x8xf32>, vector<8x8xf32> -> vector<8x8xf32>
    %264 = vector.extract_strided_slice %212 {offsets = [0, 24], sizes = [8, 8], strides = [1, 1]} : vector<8x96xf32> to vector<8x8xf32>
    %265 = vector.extract_strided_slice %212 {offsets = [0, 56], sizes = [8, 8], strides = [1, 1]} : vector<8x96xf32> to vector<8x8xf32>
    %266 = vector.extract_strided_slice %212 {offsets = [0, 88], sizes = [8, 8], strides = [1, 1]} : vector<8x96xf32> to vector<8x8xf32>
    %cst_116 = arith.constant dense<0.000000e+00> : vector<8x8xf32>
    %267 = tpu.matmul %264, %265, %cst_116 {dimension_numbers = #tpu.dot_dimension_numbers<[1], [1], [0], [0], [0, 0, 1, 0], [], []>} : vector<8x8xf32>, vector<8x8xf32>, vector<8x8xf32> -> vector<8x8xf32>
    %268 = vector.broadcast %12 : vector<1x8xf32> to vector<8x8xf32>
    %269 = arith.addf %267, %268 : vector<8x8xf32>
    %cst_117 = arith.constant dense<0xFF800000> : vector<8xf32>
    %270 = vector.multi_reduction <maximumf>, %269, %cst_117 [1] : vector<8x8xf32> to vector<8xf32>
    %271 = vector.shape_cast %270 : vector<8xf32> to vector<8x1xf32>
    %272 = vector.broadcast %271 : vector<8x1xf32> to vector<8x8xf32>
    %273 = arith.subf %269, %272 : vector<8x8xf32>
    %274 = math.exp %273 : vector<8x8xf32>
    %cst_118 = arith.constant dense<0.000000e+00> : vector<8xf32>
    %275 = vector.multi_reduction <add>, %274, %cst_118 [1] : vector<8x8xf32> to vector<8xf32>
    %276 = vector.shape_cast %275 : vector<8xf32> to vector<8x1xf32>
    %277 = tpu.reciprocal %276 {approx = true} : vector<8x1xf32> -> vector<8x1xf32>
    %278 = vector.broadcast %277 : vector<8x1xf32> to vector<8x8xf32>
    %279 = arith.mulf %274, %278 : vector<8x8xf32>
    %cst_119 = arith.constant dense<0.000000e+00> : vector<8x8xf32>
    %280 = tpu.matmul %279, %266, %cst_119 {dimension_numbers = #tpu.dot_dimension_numbers<[1], [0], [0], [1], [0, 0, 1, 1], [], []>} : vector<8x8xf32>, vector<8x8xf32>, vector<8x8xf32> -> vector<8x8xf32>
    %281 = tpu.concatenate %229, %246, %263, %280 in 1 : vector<8x8xf32>, vector<8x8xf32>, vector<8x8xf32>, vector<8x8xf32> -> vector<8x32xf32>
    %c1_120 = arith.constant 1 : index
    %c0_121 = arith.constant 0 : index
    %c0_122 = arith.constant 0 : index
    %282 = vector.load %arg9[%c1_120, %c0_121, %c0_122] : memref<2x32x32xf32, #tpu.memory_space<vmem>>, vector<1x32x32xf32>
    %283 = vector.shape_cast %282 : vector<1x32x32xf32> to vector<32x32xf32>
    %cst_123 = arith.constant dense<0.000000e+00> : vector<8x32xf32>
    %284 = tpu.matmul %281, %283, %cst_123 {dimension_numbers = #tpu.dot_dimension_numbers<[1], [0], [0], [1], [0, 0, 1, 1], [], []>} : vector<8x32xf32>, vector<32x32xf32>, vector<8x32xf32> -> vector<8x32xf32>
    %c1_124 = arith.constant 1 : index
    %c0_125 = arith.constant 0 : index
    %c0_126 = arith.constant 0 : index
    %285 = vector.load %arg10[%c1_124, %c0_125, %c0_126] : memref<2x1x32xf32, #tpu.memory_space<vmem>>, vector<1x1x32xf32>
    %286 = vector.shape_cast %285 : vector<1x1x32xf32> to vector<1x32xf32>
    %287 = vector.broadcast %286 : vector<1x32xf32> to vector<8x32xf32>
    %288 = arith.addf %284, %287 : vector<8x32xf32>
    %c1_127 = arith.constant 1 : index
    %c0_128 = arith.constant 0 : index
    %c0_129 = arith.constant 0 : index
    %289 = vector.load %arg13[%c1_127, %c0_128, %c0_129] : memref<2x1x32xf32, #tpu.memory_space<vmem>>, vector<1x1x32xf32>
    %290 = vector.shape_cast %289 : vector<1x1x32xf32> to vector<1x32xf32>
    %291 = vector.broadcast %290 : vector<1x32xf32> to vector<8x32xf32>
    %292 = arith.mulf %291, %288 : vector<8x32xf32>
    %293 = arith.addf %179, %292 : vector<8x32xf32>
    %c1_130 = arith.constant 1 : index
    %c0_131 = arith.constant 0 : index
    %c0_132 = arith.constant 0 : index
    %294 = vector.load %arg18[%c1_130, %c0_131, %c0_132] : memref<2x1x32xf32, #tpu.memory_space<vmem>>, vector<1x1x32xf32>
    %295 = vector.shape_cast %294 : vector<1x1x32xf32> to vector<1x32xf32>
    %c1_133 = arith.constant 1 : index
    %c0_134 = arith.constant 0 : index
    %c0_135 = arith.constant 0 : index
    %296 = vector.load %arg19[%c1_133, %c0_134, %c0_135] : memref<2x1x32xf32, #tpu.memory_space<vmem>>, vector<1x1x32xf32>
    %297 = vector.shape_cast %296 : vector<1x1x32xf32> to vector<1x32xf32>
    %cst_136 = arith.constant dense<0.000000e+00> : vector<8xf32>
    %298 = vector.multi_reduction <add>, %293, %cst_136 [1] : vector<8x32xf32> to vector<8xf32>
    %299 = vector.shape_cast %298 : vector<8xf32> to vector<8x1xf32>
    %cst_137 = arith.constant 3.200000e+01 : f32
    %300 = vector.broadcast %cst_137 : f32 to vector<8x1xf32>
    %301 = arith.divf %299, %300 : vector<8x1xf32>
    %302 = vector.broadcast %301 : vector<8x1xf32> to vector<8x32xf32>
    %303 = arith.subf %293, %302 : vector<8x32xf32>
    %304 = arith.mulf %303, %303 : vector<8x32xf32>
    %cst_138 = arith.constant dense<0.000000e+00> : vector<8xf32>
    %305 = vector.multi_reduction <add>, %304, %cst_138 [1] : vector<8x32xf32> to vector<8xf32>
    %306 = vector.shape_cast %305 : vector<8xf32> to vector<8x1xf32>
    %cst_139 = arith.constant 3.200000e+01 : f32
    %307 = vector.broadcast %cst_139 : f32 to vector<8x1xf32>
    %308 = arith.divf %306, %307 : vector<8x1xf32>
    %309 = vector.broadcast %301 : vector<8x1xf32> to vector<8x32xf32>
    %310 = arith.subf %293, %309 : vector<8x32xf32>
    %cst_140 = arith.constant 9.99999997E-7 : f32
    %311 = vector.broadcast %cst_140 : f32 to vector<8x1xf32>
    %312 = arith.addf %308, %311 : vector<8x1xf32>
    %313 = math.rsqrt %312 : vector<8x1xf32>
    %314 = vector.broadcast %313 : vector<8x1xf32> to vector<8x32xf32>
    %315 = arith.mulf %310, %314 : vector<8x32xf32>
    %316 = vector.broadcast %295 : vector<1x32xf32> to vector<8x32xf32>
    %317 = arith.mulf %315, %316 : vector<8x32xf32>
    %318 = vector.broadcast %297 : vector<1x32xf32> to vector<8x32xf32>
    %319 = arith.addf %317, %318 : vector<8x32xf32>
    %c1_141 = arith.constant 1 : index
    %c0_142 = arith.constant 0 : index
    %c0_143 = arith.constant 0 : index
    %320 = vector.load %arg14[%c1_141, %c0_142, %c0_143] : memref<2x32x128xf32, #tpu.memory_space<vmem>>, vector<1x32x128xf32>
    %321 = vector.shape_cast %320 : vector<1x32x128xf32> to vector<32x128xf32>
    %cst_144 = arith.constant dense<0.000000e+00> : vector<8x128xf32>
    %322 = tpu.matmul %319, %321, %cst_144 {dimension_numbers = #tpu.dot_dimension_numbers<[1], [0], [0], [1], [0, 0, 1, 1], [], []>} : vector<8x32xf32>, vector<32x128xf32>, vector<8x128xf32> -> vector<8x128xf32>
    %c1_145 = arith.constant 1 : index
    %c0_146 = arith.constant 0 : index
    %c0_147 = arith.constant 0 : index
    %323 = vector.load %arg15[%c1_145, %c0_146, %c0_147] : memref<2x1x128xf32, #tpu.memory_space<vmem>>, vector<1x1x128xf32>
    %324 = vector.shape_cast %323 : vector<1x1x128xf32> to vector<1x128xf32>
    %325 = vector.broadcast %324 : vector<1x128xf32> to vector<8x128xf32>
    %326 = arith.addf %322, %325 : vector<8x128xf32>
    %cst_148 = arith.constant 5.000000e-01 : f32
    %327 = vector.broadcast %cst_148 : f32 to vector<8x128xf32>
    %328 = arith.mulf %327, %326 : vector<8x128xf32>
    %cst_149 = arith.constant 0.707106769 : f32
    %329 = vector.broadcast %cst_149 : f32 to vector<8x128xf32>
    %330 = arith.mulf %326, %329 : vector<8x128xf32>
    %331 = math.erf %330 : vector<8x128xf32>
    %cst_150 = arith.constant 1.000000e+00 : f32
    %332 = vector.broadcast %cst_150 : f32 to vector<8x128xf32>
    %333 = arith.addf %332, %331 : vector<8x128xf32>
    %334 = arith.mulf %328, %333 : vector<8x128xf32>
    %c1_151 = arith.constant 1 : index
    %c0_152 = arith.constant 0 : index
    %c0_153 = arith.constant 0 : index
    %335 = vector.load %arg16[%c1_151, %c0_152, %c0_153] : memref<2x128x32xf32, #tpu.memory_space<vmem>>, vector<1x128x32xf32>
    %336 = vector.shape_cast %335 : vector<1x128x32xf32> to vector<128x32xf32>
    %cst_154 = arith.constant dense<0.000000e+00> : vector<8x32xf32>
    %337 = tpu.matmul %334, %336, %cst_154 {dimension_numbers = #tpu.dot_dimension_numbers<[1], [0], [0], [1], [0, 0, 1, 1], [], []>} : vector<8x128xf32>, vector<128x32xf32>, vector<8x32xf32> -> vector<8x32xf32>
    %c1_155 = arith.constant 1 : index
    %c0_156 = arith.constant 0 : index
    %c0_157 = arith.constant 0 : index
    %338 = vector.load %arg17[%c1_155, %c0_156, %c0_157] : memref<2x1x32xf32, #tpu.memory_space<vmem>>, vector<1x1x32xf32>
    %339 = vector.shape_cast %338 : vector<1x1x32xf32> to vector<1x32xf32>
    %340 = vector.broadcast %339 : vector<1x32xf32> to vector<8x32xf32>
    %341 = arith.addf %337, %340 : vector<8x32xf32>
    %c1_158 = arith.constant 1 : index
    %c0_159 = arith.constant 0 : index
    %c0_160 = arith.constant 0 : index
    %342 = vector.load %arg20[%c1_158, %c0_159, %c0_160] : memref<2x1x32xf32, #tpu.memory_space<vmem>>, vector<1x1x32xf32>
    %343 = vector.shape_cast %342 : vector<1x1x32xf32> to vector<1x32xf32>
    %344 = vector.broadcast %343 : vector<1x32xf32> to vector<8x32xf32>
    %345 = arith.mulf %344, %341 : vector<8x32xf32>
    %346 = arith.addf %293, %345 : vector<8x32xf32>
    %c0_161 = arith.constant 0 : index
    %c0_162 = arith.constant 0 : index
    %347 = vector.load %arg21[%c0_161, %c0_162] : memref<1x32xf32, #tpu.memory_space<vmem>>, vector<1x32xf32>
    %c0_163 = arith.constant 0 : index
    %c0_164 = arith.constant 0 : index
    %348 = vector.load %arg22[%c0_163, %c0_164] : memref<1x32xf32, #tpu.memory_space<vmem>>, vector<1x32xf32>
    %cst_165 = arith.constant dense<0.000000e+00> : vector<8xf32>
    %349 = vector.multi_reduction <add>, %346, %cst_165 [1] : vector<8x32xf32> to vector<8xf32>
    %350 = vector.shape_cast %349 : vector<8xf32> to vector<8x1xf32>
    %cst_166 = arith.constant 3.200000e+01 : f32
    %351 = vector.broadcast %cst_166 : f32 to vector<8x1xf32>
    %352 = arith.divf %350, %351 : vector<8x1xf32>
    %353 = vector.broadcast %352 : vector<8x1xf32> to vector<8x32xf32>
    %354 = arith.subf %346, %353 : vector<8x32xf32>
    %355 = arith.mulf %354, %354 : vector<8x32xf32>
    %cst_167 = arith.constant dense<0.000000e+00> : vector<8xf32>
    %356 = vector.multi_reduction <add>, %355, %cst_167 [1] : vector<8x32xf32> to vector<8xf32>
    %357 = vector.shape_cast %356 : vector<8xf32> to vector<8x1xf32>
    %cst_168 = arith.constant 3.200000e+01 : f32
    %358 = vector.broadcast %cst_168 : f32 to vector<8x1xf32>
    %359 = arith.divf %357, %358 : vector<8x1xf32>
    %360 = vector.broadcast %352 : vector<8x1xf32> to vector<8x32xf32>
    %361 = arith.subf %346, %360 : vector<8x32xf32>
    %cst_169 = arith.constant 9.99999997E-7 : f32
    %362 = vector.broadcast %cst_169 : f32 to vector<8x1xf32>
    %363 = arith.addf %359, %362 : vector<8x1xf32>
    %364 = math.rsqrt %363 : vector<8x1xf32>
    %365 = vector.broadcast %364 : vector<8x1xf32> to vector<8x32xf32>
    %366 = arith.mulf %361, %365 : vector<8x32xf32>
    %367 = vector.broadcast %347 : vector<1x32xf32> to vector<8x32xf32>
    %368 = arith.mulf %366, %367 : vector<8x32xf32>
    %369 = vector.broadcast %348 : vector<1x32xf32> to vector<8x32xf32>
    %370 = arith.addf %368, %369 : vector<8x32xf32>
    %371 = vector.extract_strided_slice %370 {offsets = [0, 0], sizes = [1, 32], strides = [1, 1]} : vector<8x32xf32> to vector<1x32xf32>
    %c0_170 = arith.constant 0 : index
    %c0_171 = arith.constant 0 : index
    %c0_172 = arith.constant 0 : index
    %372 = vector.load %arg23[%c0_170, %c0_171, %c0_172] : memref<1x1x32xf32, #tpu.memory_space<vmem>>, vector<1x1x32xf32>
    %373 = vector.shape_cast %372 : vector<1x1x32xf32> to vector<1x32xf32>
    %374 = vector.shape_cast %371 : vector<1x32xf32> to vector<1x1x32xf32>
    tpu.vector_store %arg23[%c0_170, %c0_171, %c0_172], %374 {strides = array<i32>} : memref<1x1x32xf32, #tpu.memory_space<vmem>>, vector<1x1x32xf32>,
    return
  }
  func.func @transform_0(%arg0: i32) -> (i32, i32, i32) {
    %c0_i32 = arith.constant 0 : i32
    %c0_i32_0 = arith.constant 0 : i32
    %c0_i32_1 = arith.constant 0 : i32
    return %arg0, %c0_i32, %c0_i32_0 : i32, i32, i32
  }
  func.func @transform_1(%arg0: i32) -> (i32, i32) {
    %c0_i32 = arith.constant 0 : i32
    %c0_i32_0 = arith.constant 0 : i32
    %c0_i32_1 = arith.constant 0 : i32
    return %c0_i32, %c0_i32_0 : i32, i32
  }
  func.func @transform_2(%arg0: i32) -> (i32, i32) {
    %c0_i32 = arith.constant 0 : i32
    %c0_i32_0 = arith.constant 0 : i32
    %c0_i32_1 = arith.constant 0 : i32
    return %c0_i32, %c0_i32_0 : i32, i32
  }
  func.func @transform_3(%arg0: i32) -> (i32, i32) {
    %c0_i32 = arith.constant 0 : i32
    %c0_i32_0 = arith.constant 0 : i32
    %c0_i32_1 = arith.constant 0 : i32
    return %c0_i32, %c0_i32_0 : i32, i32
  }
  func.func @transform_4(%arg0: i32) -> (i32, i32) {
    %c0_i32 = arith.constant 0 : i32
    %c0_i32_0 = arith.constant 0 : i32
    %c0_i32_1 = arith.constant 0 : i32
    return %c0_i32, %c0_i32_0 : i32, i32
  }
  func.func @transform_5(%arg0: i32) -> (i32, i32) {
    %c0_i32 = arith.constant 0 : i32
    %c0_i32_0 = arith.constant 0 : i32
    %c0_i32_1 = arith.constant 0 : i32
    return %c0_i32, %c0_i32_0 : i32, i32
  }
  func.func @transform_6(%arg0: i32) -> (i32, i32, i32) {
    %c0_i32 = arith.constant 0 : i32
    %c0_i32_0 = arith.constant 0 : i32
    %c0_i32_1 = arith.constant 0 : i32
    %c0_i32_2 = arith.constant 0 : i32
    return %c0_i32, %c0_i32_0, %c0_i32_1 : i32, i32, i32
  }
  func.func @transform_7(%arg0: i32) -> (i32, i32, i32) {
    %c0_i32 = arith.constant 0 : i32
    %c0_i32_0 = arith.constant 0 : i32
    %c0_i32_1 = arith.constant 0 : i32
    %c0_i32_2 = arith.constant 0 : i32
    return %c0_i32, %c0_i32_0, %c0_i32_1 : i32, i32, i32
  }
  func.func @transform_8(%arg0: i32) -> (i32, i32, i32) {
    %c0_i32 = arith.constant 0 : i32
    %c0_i32_0 = arith.constant 0 : i32
    %c0_i32_1 = arith.constant 0 : i32
    %c0_i32_2 = arith.constant 0 : i32
    return %c0_i32, %c0_i32_0, %c0_i32_1 : i32, i32, i32
  }
  func.func @transform_9(%arg0: i32) -> (i32, i32, i32) {
    %c0_i32 = arith.constant 0 : i32
    %c0_i32_0 = arith.constant 0 : i32
    %c0_i32_1 = arith.constant 0 : i32
    %c0_i32_2 = arith.constant 0 : i32
    return %c0_i32, %c0_i32_0, %c0_i32_1 : i32, i32, i32
  }
  func.func @transform_10(%arg0: i32) -> (i32, i32, i32) {
    %c0_i32 = arith.constant 0 : i32
    %c0_i32_0 = arith.constant 0 : i32
    %c0_i32_1 = arith.constant 0 : i32
    %c0_i32_2 = arith.constant 0 : i32
    return %c0_i32, %c0_i32_0, %c0_i32_1 : i32, i32, i32
  }
  func.func @transform_11(%arg0: i32) -> (i32, i32, i32) {
    %c0_i32 = arith.constant 0 : i32
    %c0_i32_0 = arith.constant 0 : i32
    %c0_i32_1 = arith.constant 0 : i32
    %c0_i32_2 = arith.constant 0 : i32
    return %c0_i32, %c0_i32_0, %c0_i32_1 : i32, i32, i32
  }
  func.func @transform_12(%arg0: i32) -> (i32, i32, i32) {
    %c0_i32 = arith.constant 0 : i32
    %c0_i32_0 = arith.constant 0 : i32
    %c0_i32_1 = arith.constant 0 : i32
    %c0_i32_2 = arith.constant 0 : i32
    return %c0_i32, %c0_i32_0, %c0_i32_1 : i32, i32, i32
  }
  func.func @transform_13(%arg0: i32) -> (i32, i32, i32) {
    %c0_i32 = arith.constant 0 : i32
    %c0_i32_0 = arith.constant 0 : i32
    %c0_i32_1 = arith.constant 0 : i32
    %c0_i32_2 = arith.constant 0 : i32
    return %c0_i32, %c0_i32_0, %c0_i32_1 : i32, i32, i32
  }
  func.func @transform_14(%arg0: i32) -> (i32, i32, i32) {
    %c0_i32 = arith.constant 0 : i32
    %c0_i32_0 = arith.constant 0 : i32
    %c0_i32_1 = arith.constant 0 : i32
    %c0_i32_2 = arith.constant 0 : i32
    return %c0_i32, %c0_i32_0, %c0_i32_1 : i32, i32, i32
  }
  func.func @transform_15(%arg0: i32) -> (i32, i32, i32) {
    %c0_i32 = arith.constant 0 : i32
    %c0_i32_0 = arith.constant 0 : i32
    %c0_i32_1 = arith.constant 0 : i32
    %c0_i32_2 = arith.constant 0 : i32
    return %c0_i32, %c0_i32_0, %c0_i32_1 : i32, i32, i32
  }
  func.func @transform_16(%arg0: i32) -> (i32, i32, i32) {
    %c0_i32 = arith.constant 0 : i32
    %c0_i32_0 = arith.constant 0 : i32
    %c0_i32_1 = arith.constant 0 : i32
    %c0_i32_2 = arith.constant 0 : i32
    return %c0_i32, %c0_i32_0, %c0_i32_1 : i32, i32, i32
  }
  func.func @transform_17(%arg0: i32) -> (i32, i32, i32) {
    %c0_i32 = arith.constant 0 : i32
    %c0_i32_0 = arith.constant 0 : i32
    %c0_i32_1 = arith.constant 0 : i32
    %c0_i32_2 = arith.constant 0 : i32
    return %c0_i32, %c0_i32_0, %c0_i32_1 : i32, i32, i32
  }
  func.func @transform_18(%arg0: i32) -> (i32, i32, i32) {
    %c0_i32 = arith.constant 0 : i32
    %c0_i32_0 = arith.constant 0 : i32
    %c0_i32_1 = arith.constant 0 : i32
    %c0_i32_2 = arith.constant 0 : i32
    return %c0_i32, %c0_i32_0, %c0_i32_1 : i32, i32, i32
  }
  func.func @transform_19(%arg0: i32) -> (i32, i32, i32) {
    %c0_i32 = arith.constant 0 : i32
    %c0_i32_0 = arith.constant 0 : i32
    %c0_i32_1 = arith.constant 0 : i32
    %c0_i32_2 = arith.constant 0 : i32
    return %c0_i32, %c0_i32_0, %c0_i32_1 : i32, i32, i32
  }
  func.func @transform_20(%arg0: i32) -> (i32, i32) {
    %c0_i32 = arith.constant 0 : i32
    %c0_i32_0 = arith.constant 0 : i32
    %c0_i32_1 = arith.constant 0 : i32
    return %c0_i32, %c0_i32_0 : i32, i32
  }
  func.func @transform_21(%arg0: i32) -> (i32, i32) {
    %c0_i32 = arith.constant 0 : i32
    %c0_i32_0 = arith.constant 0 : i32
    %c0_i32_1 = arith.constant 0 : i32
    return %c0_i32, %c0_i32_0 : i32, i32
  }
  func.func @transform_22(%arg0: i32) -> (i32, i32, i32) {
    %c0_i32 = arith.constant 0 : i32
    %c0_i32_0 = arith.constant 0 : i32
    %c0_i32_1 = arith.constant 0 : i32
    return %arg0, %c0_i32, %c0_i32_0 : i32, i32, i32
  }
}

</mosaic_0001>

<bundles_post_ra>
// kernel: deit_forward.1
= control target key start
LH: loop header
LB: loop body
LE: loop exit
PB: predicated region body
PF: predicated region fallthrough
CT: control target
= control target key end

     0   :  { %s4639_s0 = inlined_call_operand.vmem [shape: f32[2,8,192], index: 0, kind: input, shape index: {}]   ;;  %s4640_s1 = inlined_call_operand.vmem [shape: f32[8,32], index: 1, kind: input, shape index: {}]   ;;  %s4641_s2 = inlined_call_operand.vmem [shape: f32[8,1], index: 2, kind: input, shape index: {}]   ;;  %s4642_s3 = inlined_call_operand.vmem [shape: f32[1,8], index: 3, kind: input, shape index: {}]   ;;  %s4643_s4 = inlined_call_operand.vmem [shape: f32[192,32], index: 4, kind: input, shape index: {}]   ;;  %s4644_s5 = inlined_call_operand.vmem [shape: f32[1,32], index: 5, kind: input, shape index: {}]   ;;  %s4645_s6 = inlined_call_operand.vmem [shape: f32[2,32,96], index: 6, kind: input, shape index: {}]   ;;  %s4646_s7 = inlined_call_operand.vmem [shape: f32[2,1,96], index: 7, kind: input, shape index: {}]   ;;  %s4647_s8 = inlined_call_operand.vmem [shape: f32[2,32,32], index: 8, kind: input, shape index: {}]   ;;  %s4648_s9 = inlined_call_operand.vmem [shape: f32[2,1,32], index: 9, kind: input, shape index: {}]   ;;  %s4649_s10 = inlined_call_operand.vmem [shape: f32[2,1,32], index: 10, kind: input, shape index: {}]   ;;  %s4650_s11 = inlined_call_operand.vmem [shape: f32[2,1,32], index: 11, kind: input, shape index: {}]   ;;  %s4651_s12 = inlined_call_operand.vmem [shape: f32[2,1,32], index: 12, kind: input, shape index: {}]   ;;  %s4652_s13 = inlined_call_operand.vmem [shape: f32[2,32,128], index: 13, kind: input, shape index: {}]   ;;  %s4653_s14 = inlined_call_operand.vmem [shape: f32[2,1,128], index: 14, kind: input, shape index: {}]   ;;  %s4654_s15 = inlined_call_operand.vmem [shape: f32[2,128,32], index: 15, kind: input, shape index: {}]   ;;  %s4655_s16 = inlined_call_operand.vmem [shape: f32[2,1,32], index: 16, kind: input, shape index: {}]   ;;  %s4656_s17 = inlined_call_operand.vmem [shape: f32[2,1,32], index: 17, kind: input, shape index: {}]   ;;  %s4657_s18 = inlined_call_operand.vmem [shape: f32[2,1,32], index: 18, kind: input, shape index: {}]   ;;  %s4658_s19 = inlined_call_operand.vmem [shape: f32[2,1,32], index: 19, kind: input, shape index: {}]   ;;  %s4659_s20 = inlined_call_operand.vmem [shape: f32[1,32], index: 20, kind: input, shape index: {}]   ;;  %s4660_s21 = inlined_call_operand.vmem [shape: f32[1,32], index: 21, kind: input, shape index: {}]   ;;  %s4661_s22 = inlined_call_operand.hbm [shape: f32[2,1,32], index: 22, kind: output, shape index: {}]  }
   0x1   :  { %4684 = sst [smem:[#allocation11_spill]] %s4639_s0 }
   0x2   :  { %4685 = sst [smem:[#allocation12_spill]] %s4640_s1 }
   0x3   :  { %4686 = sst [smem:[#allocation13_spill]] %s4641_s2 }
   0x4   :  { %4687 = sst [smem:[#allocation14_spill]] %s4642_s3 }
   0x5   :  { %4688 = sst [smem:[#allocation15_spill]] %s4643_s4 }
   0x6   :  { %4689 = sst [smem:[#allocation16_spill]] %s4644_s5 }
   0x7   :  { %4690 = sst [smem:[#allocation17_spill]] %s4645_s6 }
   0x8   :  { %4691 = sst [smem:[#allocation18_spill]] %s4646_s7 }
   0x9   :  { %4692 = sst [smem:[#allocation19_spill]] %s4661_s22 }
   0xa   :  { %27 = vsyncpa [#allocation3], 0 }
   0xb   :  { %29 = vsyncpa [#allocation3 + $0x1], 0  ;;  %s3959_s3 = smov 0   ;;  %s3961_s28 = smov 0  }
   0xc   :  { %s3963_s29 = smov 0   ;;  %s3965_s30 = smov 0  }
   0xd LB: > { %4693 = sst [smem:[#allocation5_spill]] %s3811_s3  ;;  %s3980_s4 = sadd.s32 4294967295, %s3823_s30   ;;  %s3823_s30 = sphi %s3965_s30, %s4726_s30   ;;  %s3819_s29 = sphi %s3963_s29, %s4728_s29   ;;  %s3815_s28 = sphi %s3961_s28, %s4730_s28   ;;  %s3811_s3 = sphi %s3959_s3, %s4729_s3  }
   0xe   : > { %4694 = sst [smem:[#allocation6_spill]] %s3819_s29  ;;  %s3122_s0 = sadd.s32 4294967294, %s3823_s30  }
   0xf   : > { %4695 = sst [smem:[#allocation7_spill]] %s3823_s30  ;;  %s3984_s23 = sadd.s32 1, %s3823_s30  }
  0x10   : > { %4696 = sst [smem:[#allocation8_spill]] %s3984_s23  ;;  %s509_s1 = sadd.s32 1, %s3819_s29 }
  0x11   : > { %s506_s5 = ssub.s32 %s3823_s30, %s3984_s23  ;;  %p519_p0 = scmp.ne.s32.totalorder %s3819_s29, %s3815_s28 }
  0x12   : > { %p507_p1 = scmp.eq.s32.totalorder %s506_s5, 0  ;;  %p520_p2 = scmp.eq.s32.totalorder %s3980_s4, 1 }
  0x13   : > { %p525_p3 = scmp.ne.s32.totalorder %s3815_s28, %s3811_s3  ;;  %p526_p4 = scmp.eq.s32.totalorder %s3122_s0, 1 }
  0x14   : > { %s3995_s24 = scalar_select %p507_p1, %s3819_s29, %s509_s1  }
  0x15   : > { %p3997_p5 = por %p520_p2, %p519_p0  ;;  %p4001_p6 = por %p526_p4, %p525_p3 }
  0x16   : > { %4697 = sst [smem:[#allocation9_spill]] %s3995_s24  ;;  %p3125_p7 = scmp.ge.s32.totalorder %s3823_s30, 1 }
  0x17   : > { %s4699_s25 = scalar_select %p4001_p6, 1, 0 }
  0x18   : > { %p615_p8 = scmp.lt.s32.totalorder %s3823_s30, 3 }
  0x19   : > { %4700 = sst [smem:[#allocation10_spill]] %s4699_s25 }
  0x1a   : > { %p616_p9 = pnand %p3125_p7, %p615_p8 }
  0x1b   : > { %s4701_s27 = sld [smem:[#allocation15_spill]] (!%p616_p9)  ;;  %p676_p10 = scmp.lt.s32.totalorder (!%p616_p9), %s3980_s4, 1  ;;  %v3825_v3 = vmov (!%p616_p9), 0.0|0.0   ;;  %v3826_v6 = vmov (!%p616_p9), 0   ;;  %vm714_vm0 = vcmask (!%p616_p9), 523264   ;;  %vm800_vm1 = vcmask (!%p616_p9), 261120  }
  0x1c   : > { %619 = sbr.rel (%p616_p9) target bundleno = 8254 (0x203e), region = 108  ;;  %3537 = vmatprep.subr.bf16.mxu0 (!%p616_p9), %v3825_v3  ;;  %3573 = vmatprep.subr.bf16.mxu1 (!%p616_p9), %v3825_v3  ;;  %s4702_s25 = sld [smem:[#allocation11_spill]] (!%p616_p9)  ;;  %vm3827_vm2 = vmmov (!%p616_p9), 0   ;;  %v3828_v60 = vmov (!%p616_p9), 0.0   ;;  %vm922_vm3 = vcmask (!%p616_p9), 64512   ;;  %vm1592_vm4 = vcmask (!%p616_p9), 130048  }
  0x1d   : > { %3714 = vset.pattern.permute.xlu0 (!%p616_p9), %v3826_v6  ;;  %s4703_s1 = sld [smem:[#allocation13_spill]] (!%p616_p9)  ;;  %s4704_s22 = sld [smem:[#allocation16_spill]] (!%p616_p9)  ;;  %3329 = vmatprep.mubr.msk.f32.mxu1 (!%p616_p9), %vm3827_vm2, %v3828_v60  ;;  %vm1594_vm5 = vcmask (!%p616_p9), 195584   ;;  %vm3052_vm6 = vcmask (!%p616_p9), 253952  }
  0x1e   : > { %s4705_s29 = sld [smem:[#allocation12_spill]] (!%p616_p9)  ;;  %s4706_s24 = sld [smem:[#allocation17_spill]] (!%p616_p9) }
  0x1f   : > { %s4707_s7 = sld [smem:[#allocation18_spill]] (!%p616_p9)  ;;  %s3830_s0 = smov (!%p616_p9), 96  }
  0x20   : > { %s4683_s30 = smov (!%p616_p9), 88   ;;  %s4675_s23 = smov (!%p616_p9), 80  }
  0x21   : > { %v683_v0 = vld [vmem:[%s4701_s27] sm:$0xff] (!%p616_p9)  ;;  %v684_v1 = vld [vmem:[%s4701_s27 + $0x8] sm:$0xff] (!%p616_p9)  ;;  %v685_v2 = vld [vmem:[%s4701_s27 + $0x10] sm:$0xff] (!%p616_p9)  ;;  %s4671_s2 = smov (!%p616_p9), 48  }
  0x22   : > { %v3538_v4 = vpack.c.bf16 (!%p616_p9), %v684_v1, %v683_v0  ;;  %v686_v5 = vld [vmem:[%s4701_s27 + $0x18] sm:$0xff] (!%p616_p9)  ;;  %v687_v8 = vld [vmem:[%s4701_s27 + $0x20] sm:$0xff] (!%p616_p9)  ;;  %v688_v9 = vld [vmem:[%s4701_s27 + $0x28] sm:$0xff] (!%p616_p9) }
  0x23   : > { %s677_s26 = scalar_select %p676_p10, %s3980_s4, 1  ;;  %v3541_v7 = vpack.c.bf16 %v686_v5, %v685_v2  ;;  %v3544_v10 = vpack.c.bf16 %v688_v9, %v687_v8  ;;  %v689_v11 = vld [vmem:[%s4701_s27 + $0x30] sm:$0xff]  ;;  %v690_v12 = vld [vmem:[%s4701_s27 + $0x38] sm:$0xff]  ;;  %v788_v14 = vld [vmem:[%s4703_s1] sm:$0xff] }
  0x24   : > { %3539 = vmatpush1.bf16.msra.mxu0 %v3538_v4  ;;  %791 = vperm.xlu0 %3714, %v788_v14   ;;  %v3547_v15 = vpack.c.bf16 %v690_v12, %v689_v11  ;;  %v691_v16 = vld [vmem:[%s4701_s27 + $0x40] sm:$0xff]  ;;  %v692_v17 = vld [vmem:[%s4701_s27 + $0x48] sm:$0xff]  ;;  %v693_v19 = vld [vmem:[%s4701_s27 + $0x50] sm:$0xff]  ;;  %s4672_s1 = smov 104  }
  0x25   : > { %3540 = vmatprep.subr.bf16.mxu0 %v3825_v3  ;;  %s3224_s5 = sshll.u32 %s677_s26, 4  ;;  %v3550_v18 = vpack.c.bf16 %v692_v17, %v691_v16  ;;  %v694_v20 = vld [vmem:[%s4701_s27 + $0x58] sm:$0xff]  ;;  %v695_v22 = vld [vmem:[%s4701_s27 + $0x60] sm:$0xff]  ;;  %v696_v23 = vld [vmem:[%s4701_s27 + $0x68] sm:$0xff]  ;;  %s4680_s26 = smov 64  }
  0x26   : > { %s4033_s3 = scalar_lea.vmem %s4702_s25, %s3224_s5  ;;  %v3553_v21 = vpack.c.bf16 %v694_v20, %v693_v19  ;;  %v3556_v24 = vpack.c.bf16 %v696_v23, %v695_v22  ;;  %v697_v25 = vld [vmem:[%s4701_s27 + $0x70] sm:$0xff]  ;;  %v698_v26 = vld [vmem:[%s4701_s27 + $0x78] sm:$0xff]  ;;  %v699_v28 = vld [vmem:[%s4701_s27 + $0x80] sm:$0xff]  ;;  %s4682_s5 = smov 120  }
  0x27   : > { %v682_v13 = vld [vmem:[%s4033_s3 + $0x8] sm:$0xff]  ;;  %v3559_v27 = vpack.c.bf16 %v698_v26, %v697_v25  ;;  %v701_v31 = vld [vmem:[%s4701_s27 + $0x90] sm:$0xff]  ;;  %v702_v32 = vld [vmem:[%s4701_s27 + $0x98] sm:$0xff]  ;;  %s4676_s25 = smov 72  }
  0x28   : > { %3542 = vmatpush1.bf16.msra.mxu0 %v3541_v7  ;;  %3129 = vmatprep.mubr.msk.f32.mxu0 %vm714_vm0, %v682_v13  ;;  %v700_v29 = vld [vmem:[%s4701_s27 + $0x88] sm:$0xff]  ;;  %v3565_v33 = vpack.c.bf16 %v702_v32, %v701_v31  ;;  %v703_v34 = vld [vmem:[%s4701_s27 + $0xa0] sm:$0xff]  ;;  %v705_v37 = vld [vmem:[%s4701_s27 + $0xb0] sm:$0xff] }
  0x29   : > { %3543 = vmatprep.subr.bf16.mxu0 %v3825_v3  ;;  %v3562_v30 = vpack.c.bf16 %v700_v29, %v699_v28  ;;  %v704_v35 = vld [vmem:[%s4701_s27 + $0xa8] sm:$0xff]  ;;  %v706_v38 = vld [vmem:[%s4701_s27 + $0xb8] sm:$0xff]  ;;  %v681_v40 = vld [vmem:[%s4033_s3] sm:$0xff]  ;;  %s4677_s3 = smov 112  }
  0x2a   : > { %v3568_v36 = vpack.c.bf16 %v704_v35, %v703_v34  ;;  %v3571_v39 = vpack.c.bf16 %v706_v38, %v705_v37  ;;  %v3128_v41 = vld [vmem:[%s4704_s22] ss:$0 sm:$0xff]  ;;  %v830_v56 = vld [vmem:[%s4706_s24 + $0x8] sm:$0xff]  ;;  %v831_v57 = vld [vmem:[%s4706_s24 + $0x10] sm:$0xff]  ;;  %s4708_s22 = sld [smem:[#allocation14_spill]] }
  0x2b   : > { %v795_v46 = vld [vmem:[%s4705_s29] sm:$0xff]  ;;  %v832_v59 = vld [vmem:[%s4706_s24 + $0x18] sm:$0xff]  ;;  %s4678_s29 = smov 56  }
  0x2c   : > { %3545 = vmatpush1.bf16.msra.mxu0 %v3544_v10  ;;  %v829_v55 = vld [vmem:[%s4706_s24] sm:$0xff]  ;;  %v3577_v61 = vpack.c.bf16 %v832_v59, %v831_v57 }
  0x2d   : > { %3546 = vmatprep.subr.bf16.mxu0 %v3825_v3  ;;  %v3574_v58 = vpack.c.bf16 %v830_v56, %v829_v55  ;;  %v3130_v2 = vld [vmem:[%s4649_s10] ss:$0 sm:$0xff] }
  0x2e   : > { %v3131_v5 = vld [vmem:[%s4650_s11] ss:$0 sm:$0xff] }
  0x2f   : > { %3575 = vmatpush3.bf16.msra.mxu1 %v3574_v58  ;;  %v3132_v8 = vld [vmem:[%s4707_s7] ss:$0 sm:$0xff] }
  0x30   : > { %3548 = vmatpush1.bf16.msra.mxu0 %v3547_v15  ;;  %3576 = vmatprep.subr.bf16.mxu1 %v3825_v3  ;;  %v4163_v14 = vld [vmem:[%s4708_s22] ss:$0 sm:$0xff]  ;;  %s4674_s22 = smov 40  }
  0x31   : > { %3549 = vmatprep.subr.bf16.mxu0 %v3825_v3 }
  0x33   : > { %3578 = vmatpush3.bf16.msra.mxu1 %v3577_v61 }
  0x34   : > { %3551 = vmatpush1.bf16.msra.mxu0 %v3550_v18  ;;  %3332 = vmatprep.subr.mxu1 %v3828_v60 }
  0x35   : > { %3552 = vmatprep.subr.bf16.mxu0 %v3825_v3 }
  0x38   : > { %3554 = vmatpush1.bf16.msra.mxu0 %v3553_v21 }
  0x39   : > { %3555 = vmatprep.subr.bf16.mxu0 %v3825_v3 }
  0x3c   : > { %3557 = vmatpush1.bf16.msra.mxu0 %v3556_v24 }
  0x3d   : > { %3558 = vmatprep.subr.bf16.mxu0 %v3825_v3 }
  0x40   : > { %3560 = vmatpush1.bf16.msra.mxu0 %v3559_v27 }
  0x41   : > { %3561 = vmatprep.subr.bf16.mxu0 %v3825_v3 }
  0x44   : > { %3563 = vmatpush1.bf16.msra.mxu0 %v3562_v30 }
  0x45   : > { %3564 = vmatprep.subr.bf16.mxu0 %v3825_v3 }
  0x48   : > { %3566 = vmatpush1.bf16.msra.mxu0 %v3565_v33 }
  0x49   : > { %3567 = vmatprep.subr.bf16.mxu0 %v3825_v3 }
  0x4c   : > { %3569 = vmatpush1.bf16.msra.mxu0 %v3568_v36 }
  0x4d   : > { %3570 = vmatprep.subr.bf16.mxu0 %v3825_v3 }
  0x50   : > { %3572 = vmatpush1.bf16.msra.mxu0 %v3571_v39 }
  0x51   : > { %3440 = vmatprep.subr.mxu0 %v3828_v60 }
  0x53   : > { %783 = vmatmul.mubr.f32.vlgmr.msra.gmra.mrb[0].mxu0 %v681_v40 }
  0x54   : > { %3442 = vmatprep.mubr.msk.f32.mxu0 %vm3827_vm2, %v3828_v60 }
  0xa3   : > { %v792_v43 = vpop.permute.xlu0 %791 }
 0x126   : > { %v784_v42 = vpop.f32.mrb[0].mxu0 }
 0x127   : > { %v785_v44 = vadd.f32 %v3128_v41, %v784_v42  ;;  %v786_v45 = vpop.f32.mrb[1].mxu0 }
 0x129   : > { %v794_v47 = vmul.f32 %v792_v43, %v785_v44 }
 0x12b   : > { %v4110_v48 = vadd.f32 %v795_v46, %v794_v47 }
 0x12d   : > { %v801_v49 = vsel %vm800_vm1, %v4110_v48, 0.0 }
 0x12e   : > { %802 = vadd.xlane.f32.xlu0 %v801_v49 }
 0x1bb   : > { %v803_v50 = vpop.xlane.xlu0 %802 }
 0x1bc   : > { %v805_v51 = vmul.f32 0.03125, %v803_v50 }
 0x1be   : > { %v806_v52 = vsub.f32 %v4110_v48, %v805_v51 }
 0x1c0   : > { %v807_v53 = vmul.f32 %v806_v52, %v806_v52 }
 0x1c2   : > { %v808_v54 = vsel %vm800_vm1, %v807_v53, 0.0 }
 0x1c3   : > { %809 = vadd.xlane.f32.xlu1 %v808_v54 }
 0x250   : > { %v810_v62 = vpop.xlane.xlu1 %809 }
 0x251   : > { %v811_v63 = vmul.f32 0.03125, %v810_v62 }
 0x253   : > { %v812_v0 = vadd.f32 1e-06, %v811_v63 }
 0x255   : > { %3715 = vrsqrt.f32 %v812_v0 }
 0x25f   : > { %v3716_v1 = vpop.eup %3715 }
 0x260   : > { %v814_v4 = vmul.f32 %v3716_v1, %v806_v52 }
 0x262   : > { %v821_v6 = vmul.f32 %v3130_v2, %v814_v4 }
 0x264   : > { %v828_v7 = vadd.f32 %v3131_v5, %v821_v6 }
 0x266   : > { %3330 = vmatmul.mubr.msk.f32.vlgmr.msra.gmra.mrb[0].mxu1 %vm800_vm1, %v828_v7 }
 0x267   : > { %3334 = vmatprep.mubr.msk.f32.mxu1 %vm3827_vm2, %v3828_v60 }
 0x339   : > { %v909_v9 = vpop.f32.mrb[0].mxu1 }
 0x33a   : > { %v4147_v10 = vadd.f32 %v3132_v8, %v909_v9  ;;  %v3331_v11 = vpop.f32.mrb[1].mxu1 }
 0x33c   : > { %1008 = vrot.lane.b32.xlu0 %v4147_v10, %s4680_s26  ;;  %920 = vrot.lane.b32.xlu1 %v4147_v10, %s3830_s0  ;;  %s4717_s26 = smov 40  }
 0x3ae   : > { %v921_v12 = vpop.permute.xlu1 %920  ;;  %v1009_v13 = vpop.permute.xlu0 %1008 }
 0x3af   : > { %3333 = vmatpush3.xpose.msk.msra.mxu1 %vm922_vm3, %v921_v12 }
 0x3b0   : > { %3337 = vmatprep.subr.mxu1 %v3828_v60 }
 0x3b2   : > { %3335 = vmatmul.mubr.msk.f32.vlgmr.msra.gmra.mrb[2].mxu1 %vm922_vm3, %v4147_v10 }
 0x3b3   : > { %3338 = vmatpush3.msra.mxu1 %v1009_v13  ;;  %3339 = vmatprep.mubr.msk.f32.mxu1 %vm3827_vm2, %v3828_v60 }
 0x3b4   : > { %3342 = vmatprep.subr.mxu1 %v3828_v60 }
 0x485   : > { %v993_v15 = vpop.f32.mrb[2].mxu1 }
 0x486   : > { %v994_v16 = vadd.f32 %v4163_v14, %v993_v15  ;;  %v3336_v17 = vpop.f32.mrb[3].mxu1 }
 0x488   : > { %v997_v18 = vsel %vm922_vm3, %v994_v16, -inf }
 0x489   : > { %998 = vmax.xlane.f32.xlu1 %v997_v18  ;;  %v1596_v18 = vld [vmem:[%s4647_s8] sm:$0xff] }
 0x49a   : > { %1086 = vrot.lane.b32.xlu1 %v4147_v10, %s4683_s30  ;;  %s4719_s30 = smov 8  }
 0x516   : > { %v999_v19 = vpop.xlane.xlu1 %998 }
 0x517   : > { %v1000_v20 = vsub.f32 %v994_v16, %v999_v19  ;;  %v1597_v19 = vld [vmem:[%s4647_s8 + $0x8] sm:$0xff] }
 0x519   : > { %v1001_v21 = vmul.f32 1.442695, %v1000_v20  ;;  %v1598_v20 = vld [vmem:[%s4647_s8 + $0x10] sm:$0xff] }
 0x51a   : > { %v1087_v27 = vpop.permute.xlu1 %1086 }
 0x51b   : > { %3717 = vpow2.f32 %v1001_v21  ;;  %v3580_v21 = vpack.c.bf16 %v1597_v19, %v1596_v18  ;;  %v1820_v18 = vld [vmem:[%s4654_s15 + $0x68] sm:$0xff] }
 0x525   : > { %v3718_v22 = vpop.eup %3717 }
 0x526   : > { %v1003_v23 = vsel %vm922_vm3, %v3718_v22, 0.0 }
 0x527   : > { %1004 = vadd.xlane.f32.xlu0 %v1003_v23 }
 0x53d   : > { %1084 = vrot.lane.b32.xlu0 %v4147_v10, %s4682_s5  ;;  %s4709_s5 = smov 88  }
 0x5b4   : > { %v1005_v24 = vpop.xlane.xlu0 %1004 }
 0x5b5   : > { %3719 = vrcp.f32 %v1005_v24 }
 0x5b8   : > { %v1085_v28 = vpop.permute.xlu0 %1084 }
 0x5bf   : > { %v3720_v25 = vpop.eup %3719 }
 0x5c0   : > { %v1007_v26 = vmul.f32 %v3720_v25, %v3718_v22  ;;  %v1599_v22 = vld [vmem:[%s4647_s8 + $0x18] sm:$0xff] }
 0x5c1   : > { %v3583_v23 = vpack.c.bf16 %v1599_v22, %v1598_v20  ;;  %v1821_v20 = vld [vmem:[%s4654_s15 + $0x70] sm:$0xff] }
 0x5c2   : > { %3340 = vmatmul.mubr.msk.f32.vlgmr.msra.gmra.mrb[4].mxu1 %vm922_vm3, %v1007_v26 }
 0x5c3   : > { %3343 = vmatpush3.xpose.msk.msra.mxu1 %vm922_vm3, %v1087_v27  ;;  %3344 = vmatprep.mubr.msk.f32.mxu1 %vm3827_vm2, %v3828_v60 }
 0x5c4   : > { %3347 = vmatprep.subr.mxu1 %v3828_v60 }
 0x5c6   : > { %3345 = vmatmul.mubr.msk.f32.vlgmr.msra.gmra.mrb[6].mxu1 %vm922_vm3, %v1085_v28 }
 0x5c7   : > { %3349 = vmatprep.mubr.msk.f32.mxu1 %vm3827_vm2, %v3828_v60 }
 0x695   : > { %v4180_v29 = vpop.f32.mrb[4].mxu1 }
 0x696   : > { %v3341_v30 = vpop.f32.mrb[5].mxu1 }
 0x699   : > { %v1158_v31 = vpop.f32.mrb[6].mxu1 }
 0x69a   : > { %v1159_v32 = vadd.f32 %v4163_v14, %v1158_v31  ;;  %v3346_v33 = vpop.f32.mrb[7].mxu1 }
 0x69b   : > { %v3147_v33 = vld [vmem:[%s4648_s9] ss:$0 sm:$0xff] }
 0x69c   : > { %v1162_v34 = vsel %vm922_vm3, %v1159_v32, -inf }
 0x69d   : > { %1163 = vmax.xlane.f32.xlu0 %v1162_v34 }
 0x6b3   : > { %1173 = vrot.lane.b32.xlu0 %v4147_v10, %s4678_s29  ;;  %s4710_s29 = smov 120  }
 0x6b7   : > { %1249 = vrot.lane.b32.xlu0 %v4147_v10, %s4677_s3  ;;  %s4712_s3 = smov 56  }
 0x72a   : > { %v1164_v35 = vpop.xlane.xlu0 %1163 }
 0x72b   : > { %v1165_v36 = vsub.f32 %v1159_v32, %v1164_v35 }
 0x72d   : > { %v1166_v37 = vmul.f32 1.442695, %v1165_v36 }
 0x72e   : > { %v1174_v38 = vpop.permute.xlu0 %1173 }
 0x72f   : > { %3721 = vpow2.f32 %v1166_v37  ;;  %3348 = vmatpush3.msra.mxu1 %v1174_v38 }
 0x730   : > { %3352 = vmatprep.subr.mxu1 %v3828_v60 }
 0x732   : > { %v1250_v45 = vpop.permute.xlu0 %1249 }
 0x739   : > { %v3722_v39 = vpop.eup %3721 }
 0x73a   : > { %v1168_v40 = vsel %vm922_vm3, %v3722_v39, 0.0 }
 0x73b   : > { %1169 = vadd.xlane.f32.xlu1 %v1168_v40 }
 0x74c   : > { %1251 = vrot.lane.b32.xlu1 %v4147_v10, %s4675_s23  ;;  %s4713_s23 = smov 112  }
 0x7c8   : > { %v1170_v41 = vpop.xlane.xlu1 %1169 }
 0x7c9   : > { %3723 = vrcp.f32 %v1170_v41 }
 0x7cc   : > { %v1252_v44 = vpop.permute.xlu1 %1251 }
 0x7d3   : > { %v3724_v42 = vpop.eup %3723 }
 0x7d4   : > { %v1172_v43 = vmul.f32 %v3724_v42, %v3722_v39 }
 0x7d6   : > { %3350 = vmatmul.mubr.msk.f32.vlgmr.msra.gmra.mrb[8].mxu1 %vm922_vm3, %v1172_v43 }
 0x7d7   : > { %3353 = vmatpush3.xpose.msk.msra.mxu1 %vm922_vm3, %v1252_v44  ;;  %3354 = vmatprep.mubr.msk.f32.mxu1 %vm3827_vm2, %v3828_v60 }
 0x7d8   : > { %3357 = vmatprep.subr.mxu1 %v3828_v60 }
 0x7da   : > { %3355 = vmatmul.mubr.msk.f32.vlgmr.msra.gmra.mrb[10].mxu1 %vm922_vm3, %v1250_v45  ;;  %v1718_v45 = vld [vmem:[%s4652_s13] sm:$0xff] }
 0x7db   : > { %3359 = vmatprep.mubr.msk.f32.mxu1 %vm3827_vm2, %v3828_v60 }
 0x8a9   : > { %v1245_v46 = vpop.f32.mrb[8].mxu1 }
 0x8aa   : > { %v3351_v47 = vpop.f32.mrb[9].mxu1 }
 0x8ab   : > { %v1720_v47 = vld [vmem:[%s4652_s13 + $0x10] sm:$0xff] }
 0x8ad   : > { %v1323_v49 = vpop.f32.mrb[10].mxu1 }
 0x8ae   : > { %v1324_v50 = vadd.f32 %v4163_v14, %v1323_v49  ;;  %v3356_v51 = vpop.f32.mrb[11].mxu1  ;;  %v1721_v49 = vld [vmem:[%s4652_s13 + $0x18] sm:$0xff] }
 0x8b0   : > { %v1327_v52 = vsel %vm922_vm3, %v1324_v50, -inf }
 0x8b1   : > { %1328 = vmax.xlane.f32.xlu0 %v1327_v52 }
 0x8c7   : > { %1338 = vrot.lane.b32.xlu0 %v4147_v10, %s4671_s2  ;;  %s4673_s2 = smov 16  }
 0x8cb   : > { %1414 = vrot.lane.b32.xlu0 %v4147_v10, %s4672_s1  ;;  %s4679_s1 = smov 8  }
 0x93e   : > { %v1329_v53 = vpop.xlane.xlu0 %1328 }
 0x93f   : > { %v1330_v54 = vsub.f32 %v1324_v50, %v1329_v53  ;;  %v3589_v50 = vpack.c.bf16 %v1721_v49, %v1720_v47  ;;  %v3162_v47 = vld [vmem:[%s4706_s24 + $0x30] sm:$0xff]  ;;  %v3163_v49 = vld [vmem:[%s4706_s24 + $0x38] sm:$0xff] }
 0x941   : > { %v1331_v55 = vmul.f32 1.442695, %v1330_v54 }
 0x942   : > { %v1339_v56 = vpop.permute.xlu0 %1338 }
 0x943   : > { %3725 = vpow2.f32 %v1331_v55  ;;  %3358 = vmatpush3.msra.mxu1 %v1339_v56  ;;  %v3150_v55 = vld [vmem:[%s4656_s17] ss:$0 sm:$0xff] }
 0x944   : > { %3362 = vmatprep.subr.mxu1 %v3828_v60 }
 0x946   : > { %v1415_v0 = vpop.permute.xlu0 %1414 }
 0x94d   : > { %v3726_v57 = vpop.eup %3725 }
 0x94e   : > { %v1333_v58 = vsel %vm922_vm3, %v3726_v57, 0.0 }
 0x94f   : > { %1334 = vadd.xlane.f32.xlu1 %v1333_v58  ;;  %v1808_v58 = vld [vmem:[%s4654_s15 + $0x8] sm:$0xff] }
 0x960   : > { %1416 = vrot.lane.b32.xlu1 %v4147_v10, %s4676_s25  ;;  %s4715_s25 = smov 80  }
 0x9dc   : > { %v1335_v59 = vpop.xlane.xlu1 %1334 }
 0x9dd   : > { %3727 = vrcp.f32 %v1335_v59  ;;  %v3151_v59 = vld [vmem:[%s4657_s18] ss:$0 sm:$0xff] }
 0x9e0   : > { %v1417_v63 = vpop.permute.xlu1 %1416 }
 0x9e7   : > { %v3728_v61 = vpop.eup %3727 }
 0x9e8   : > { %v1337_v62 = vmul.f32 %v3728_v61, %v3726_v57  ;;  %v1807_v57 = vld [vmem:[%s4654_s15] sm:$0xff] }
 0x9ea   : > { %3360 = vmatmul.mubr.msk.f32.vlgmr.msra.gmra.mrb[12].mxu1 %vm922_vm3, %v1337_v62  ;;  %v3592_v62 = vpack.c.bf16 %v1808_v58, %v1807_v57  ;;  %v3159_v57 = vld [vmem:[%s4650_s11 + $0x1] ss:$0 sm:$0xff] }
 0x9eb   : > { %3363 = vmatpush3.xpose.msk.msra.mxu1 %vm922_vm3, %v1417_v63  ;;  %3364 = vmatprep.mubr.msk.f32.mxu1 %vm3827_vm2, %v3828_v60 }
 0x9ec   : > { %3367 = vmatprep.subr.mxu1 %v3828_v60 }
 0x9ee   : > { %3365 = vmatmul.mubr.msk.f32.vlgmr.msra.gmra.mrb[14].mxu1 %vm922_vm3, %v1415_v0  ;;  %v1809_v0 = vld [vmem:[%s4654_s15 + $0x10] sm:$0xff] }
 0x9ef   : > { %3369 = vmatprep.mubr.msk.f32.mxu1 %vm3827_vm2, %v3828_v60 }
 0xabd   : > { %v1410_v1 = vpop.f32.mrb[12].mxu1 }
 0xabe   : > { %v3361_v2 = vpop.f32.mrb[13].mxu1 }
 0xac1   : > { %v1488_v4 = vpop.f32.mrb[14].mxu1 }
 0xac2   : > { %v1489_v5 = vadd.f32 %v4163_v14, %v1488_v4  ;;  %v3366_v6 = vpop.f32.mrb[15].mxu1  ;;  %v1811_v4 = vld [vmem:[%s4654_s15 + $0x20] sm:$0xff] }
 0xac4   : > { %v1492_v7 = vsel %vm922_vm3, %v1489_v5, -inf }
 0xac5   : > { %1493 = vmax.xlane.f32.xlu0 %v1492_v7  ;;  %v1813_v7 = vld [vmem:[%s4654_s15 + $0x30] sm:$0xff] }
 0xadb   : > { %1503 = vrot.lane.b32.xlu0 %v4147_v10, %s4674_s22  ;;  %s4716_s22 = smov 104  }
 0xadf   : > { %1584 = vrot.lane.b32.xlu0 %v1410_v1, %s4673_s2  ;;  %s4681_s2 = smov 24   ;;  %v1810_v1 = vld [vmem:[%s4654_s15 + $0x18] sm:$0xff] }
 0xae0   : > { %v3595_v2 = vpack.c.bf16 %v1810_v1, %v1809_v0 }
 0xb52   : > { %v1494_v8 = vpop.xlane.xlu0 %1493 }
 0xb53   : > { %v1495_v9 = vsub.f32 %v1489_v5, %v1494_v8  ;;  %v1812_v5 = vld [vmem:[%s4654_s15 + $0x28] sm:$0xff]  ;;  %v1814_v8 = vld [vmem:[%s4654_s15 + $0x38] sm:$0xff] }
 0xb54   : > { %v3598_v6 = vpack.c.bf16 %v1812_v5, %v1811_v4 }
 0xb55   : > { %v1496_v11 = vmul.f32 1.442695, %v1495_v9  ;;  %v3601_v9 = vpack.c.bf16 %v1814_v8, %v1813_v7 }
 0xb56   : > { %v1504_v12 = vpop.permute.xlu0 %1503 }
 0xb57   : > { %3729 = vpow2.f32 %v1496_v11  ;;  %3368 = vmatpush3.msra.mxu1 %v1504_v12  ;;  %v1815_v11 = vld [vmem:[%s4654_s15 + $0x40] sm:$0xff]  ;;  %v1816_v12 = vld [vmem:[%s4654_s15 + $0x48] sm:$0xff] }
 0xb58   : > { %3579 = vmatprep.subr.bf16.mxu1 %v3825_v3 }
 0xb5a   : > { %v1585_v28 = vpop.permute.xlu0 %1584 }
 0xb61   : > { %v3730_v13 = vpop.eup %3729 }
 0xb62   : > { %v1498_v15 = vsel %vm922_vm3, %v3730_v13, 0.0 }
 0xb63   : > { %1499 = vadd.xlane.f32.xlu1 %v1498_v15  ;;  %v1817_v15 = vld [vmem:[%s4654_s15 + $0x50] sm:$0xff] }
 0xb74   : > { %1580 = vrot.lane.b32.xlu1 %v1245_v46, %s4679_s1  ;;  %s4714_s1 = smov 72  }
 0xbf0   : > { %v1500_v16 = vpop.xlane.xlu1 %1499 }
 0xbf1   : > { %3731 = vrcp.f32 %v1500_v16  ;;  %v1818_v16 = vld [vmem:[%s4654_s15 + $0x58] sm:$0xff] }
 0xbf4   : > { %v1581_v26 = vpop.permute.xlu1 %1580 }
 0xbf5   : > { %v1591_v27 = vsel %vm922_vm3, %v4180_v29, %v1581_v26  ;;  %v3149_v29 = vld [vmem:[%s4651_s12] ss:$0 sm:$0xff] }
 0xbf6   : > { %v1593_v30 = vsel %vm1592_vm4, %v1591_v27, %v1585_v28 }
 0xbfb   : > { %v3732_v10 = vpop.eup %3731 }
 0xbfc   : > { %v1502_v17 = vmul.f32 %v3732_v10, %v3730_v13  ;;  %v3604_v13 = vpack.c.bf16 %v1816_v12, %v1815_v11  ;;  %v3607_v10 = vpack.c.bf16 %v1818_v16, %v1817_v15 }
 0xbfe   : > { %3370 = vmatmul.mubr.msk.f32.vlgmr.msra.gmra.mrb[16].mxu1 %vm922_vm3, %v1502_v17  ;;  %v1819_v17 = vld [vmem:[%s4654_s15 + $0x60] sm:$0xff] }
 0xbff   : > { %3380 = vmatprep.mubr.msk.f32.mxu1 %vm3827_vm2, %v3828_v60  ;;  %3581 = vmatpush3.bf16.msra.mxu1 %v3580_v21  ;;  %v3610_v19 = vpack.c.bf16 %v1820_v18, %v1819_v17  ;;  %v1822_v21 = vld [vmem:[%s4654_s15 + $0x78] sm:$0xff] }
 0xc00   : > { %3582 = vmatprep.subr.bf16.mxu1 %v3825_v3  ;;  %v3613_v22 = vpack.c.bf16 %v1822_v21, %v1821_v20 }
 0xc03   : > { %3584 = vmatpush3.bf16.msra.mxu1 %v3583_v23  ;;  %v3152_v23 = vld [vmem:[%s4653_s14] ss:$0 sm:$0xff] }
 0xc04   : > { %3585 = vmatprep.subr.bf16.mxu1 %v3825_v3 }
 0xcd1   : > { %v1575_v24 = vpop.f32.mrb[16].mxu1 }
 0xcd2   : > { %1588 = vrot.lane.b32.xlu1 %v1575_v24, %s4681_s2  ;;  %v3371_v25 = vpop.f32.mrb[17].mxu1  ;;  %s4718_s2 = smov 48  }
 0xd44   : > { %v1589_v31 = vpop.permute.xlu1 %1588 }
 0xd45   : > { %v1595_v32 = vsel %vm1594_vm5, %v1593_v30, %v1589_v31 }
 0xd46   : > { %3381 = vmatmul.mubr.msk.f32.vlgmr.msra.gmra.mrb[18].mxu1 %vm800_vm1, %v1595_v32 }
 0xd47   : > { %3391 = vmatprep.mubr.msk.f32.mxu1 %vm3827_vm2, %v3828_v60 }
 0xe19   : > { %v1676_v34 = vpop.f32.mrb[18].mxu1 }
 0xe1a   : > { %v1677_v35 = vadd.f32 %v3147_v33, %v1676_v34  ;;  %v3382_v36 = vpop.f32.mrb[19].mxu1  ;;  %v3154_v33 = vld [vmem:[%s4655_s16] ss:$0 sm:$0xff] }
 0xe1c   : > { %v1687_v37 = vmul.f32 %v3149_v29, %v1677_v35  ;;  %v3155_v29 = vld [vmem:[%s4658_s19] ss:$0 sm:$0xff] }
 0xe1e   : > { %v4258_v38 = vadd.f32 %v1687_v37, %v4110_v48  ;;  %v1719_v48 = vld [vmem:[%s4652_s13 + $0x8] sm:$0xff] }
 0xe1f   : > { %v3586_v46 = vpack.c.bf16 %v1719_v48, %v1718_v45  ;;  %v3160_v48 = vld [vmem:[%s4706_s24 + $0x20] sm:$0xff] }
 0xe20   : > { %v1691_v39 = vsel %vm800_vm1, %v4258_v38, 0.0 }
 0xe21   : > { %1692 = vadd.xlane.f32.xlu0 %v1691_v39  ;;  %3587 = vmatpush3.bf16.msra.mxu1 %v3586_v46 }
 0xe22   : > { %3588 = vmatprep.subr.bf16.mxu1 %v3825_v3 }
 0xe25   : > { %3590 = vmatpush3.bf16.msra.mxu1 %v3589_v50  ;;  %v3619_v50 = vpack.c.bf16 %v3163_v49, %v3162_v47 }
 0xe26   : > { %3591 = vmatprep.subr.bf16.mxu1 %v3825_v3 }
 0xeae   : > { %v1693_v40 = vpop.xlane.xlu0 %1692 }
 0xeaf   : > { %v1694_v41 = vmul.f32 0.03125, %v1693_v40 }
 0xeb1   : > { %v1695_v42 = vsub.f32 %v4258_v38, %v1694_v41 }
 0xeb3   : > { %v1696_v43 = vmul.f32 %v1695_v42, %v1695_v42 }
 0xeb5   : > { %v1697_v44 = vsel %vm800_vm1, %v1696_v43, 0.0 }
 0xeb6   : > { %1698 = vadd.xlane.f32.xlu1 %v1697_v44 }
 0xf43   : > { %v1699_v51 = vpop.xlane.xlu1 %1698 }
 0xf44   : > { %v1700_v52 = vmul.f32 0.03125, %v1699_v51 }
 0xf46   : > { %v1701_v53 = vadd.f32 1e-06, %v1700_v52 }
 0xf48   : > { %3733 = vrsqrt.f32 %v1701_v53 }
 0xf52   : > { %v3734_v54 = vpop.eup %3733 }
 0xf53   : > { %v1703_v56 = vmul.f32 %v3734_v54, %v1695_v42 }
 0xf55   : > { %v1710_v61 = vmul.f32 %v3150_v55, %v1703_v56  ;;  %v3158_v55 = vld [vmem:[%s4649_s10 + $0x1] ss:$0 sm:$0xff] }
 0xf57   : > { %v1717_v63 = vadd.f32 %v3151_v59, %v1710_v61  ;;  %v3165_v61 = vld [vmem:[%s4707_s7 + $0x1] ss:$0 sm:$0xff] }
 0xf59   : > { %3392 = vmatmul.mubr.msk.f32.vlgmr.msra.gmra.mrb[20].mxu1 %vm800_vm1, %v1717_v63 }
 0xf5a   : > { %3593 = vmatpush3.bf16.msra.mxu1 %v3592_v62  ;;  %3426 = vmatprep.mubr.msk.f32.mxu1 %vm3827_vm2, %v3828_v60 }
 0xf5b   : > { %3594 = vmatprep.subr.bf16.mxu1 %v3825_v3 }
 0xf5e   : > { %3596 = vmatpush3.bf16.msra.mxu1 %v3595_v2 }
 0xf5f   : > { %3597 = vmatprep.subr.bf16.mxu1 %v3825_v3 }
 0xf62   : > { %3599 = vmatpush3.bf16.msra.mxu1 %v3598_v6 }
 0xf63   : > { %3600 = vmatprep.subr.bf16.mxu1 %v3825_v3 }
 0xf66   : > { %3602 = vmatpush3.bf16.msra.mxu1 %v3601_v9 }
 0xf67   : > { %3603 = vmatprep.subr.bf16.mxu1 %v3825_v3 }
 0xf6a   : > { %3605 = vmatpush3.bf16.msra.mxu1 %v3604_v13 }
 0xf6b   : > { %3606 = vmatprep.subr.bf16.mxu1 %v3825_v3 }
 0xf6e   : > { %3608 = vmatpush3.bf16.msra.mxu1 %v3607_v10 }
 0xf6f   : > { %3609 = vmatprep.subr.bf16.mxu1 %v3825_v3 }
 0xf72   : > { %3611 = vmatpush3.bf16.msra.mxu1 %v3610_v19 }
 0xf73   : > { %3612 = vmatprep.subr.bf16.mxu1 %v3825_v3 }
 0xf76   : > { %3614 = vmatpush3.bf16.msra.mxu1 %v3613_v22 }
 0xf77   : > { %3615 = vmatprep.subr.bf16.mxu1 %v3825_v3 }
0x102c   : > { %v1798_v24 = vpop.f32.mrb[20].mxu1 }
0x102d   : > { %v1799_v25 = vadd.f32 %v3152_v23, %v1798_v24  ;;  %v3393_v26 = vpop.f32.mrb[21].mxu1 }
0x102f   : > { %v1803_v27 = vmul.f32 0.70710677, %v1799_v25  ;;  %v1802_v30 = vmul.f32 0.5, %v1799_v25 }
0x1031   : > { %3735 = verf.f32 %v1803_v27 }
0x103b   : > { %v3736_v28 = vpop.eup %3735 }
0x103c   : > { %v1805_v31 = vadd.f32 1.0, %v3736_v28 }
0x103e   : > { %v1806_v32 = vmul.f32 %v1805_v31, %v1802_v30 }
0x1040   : > { %3427 = vmatmul.mubr.f32.vlgmr.msra.gmra.mrb[22].mxu1 %v1806_v32 }
0x1041   : > { %3437 = vmatprep.mubr.msk.f32.mxu1 %vm3827_vm2, %v3828_v60 }
0x1113   : > { %v1896_v34 = vpop.f32.mrb[22].mxu1 }
0x1114   : > { %v1897_v35 = vadd.f32 %v3154_v33, %v1896_v34  ;;  %v3428_v36 = vpop.f32.mrb[23].mxu1 }
0x1116   : > { %v1907_v37 = vmul.f32 %v3155_v29, %v1897_v35 }
0x1118   : > { %v4355_v39 = vadd.f32 %v1907_v37, %v4258_v38  ;;  %v3161_v38 = vld [vmem:[%s4706_s24 + $0x28] sm:$0xff] }
0x1119   : > { %v3616_v46 = vpack.c.bf16 %v3161_v38, %v3160_v48 }
0x111a   : > { %v1913_v40 = vsel %vm800_vm1, %v4355_v39, 0.0 }
0x111b   : > { %1914 = vadd.xlane.f32.xlu0 %v1913_v40  ;;  %3617 = vmatpush3.bf16.msra.mxu1 %v3616_v46 }
0x111c   : > { %3618 = vmatprep.subr.bf16.mxu1 %v3825_v3 }
0x111f   : > { %3620 = vmatpush3.bf16.msra.mxu1 %v3619_v50 }
0x1120   : > { %3465 = vmatprep.subr.mxu1 %v3828_v60 }
0x11a8   : > { %v1915_v41 = vpop.xlane.xlu0 %1914 }
0x11a9   : > { %v1916_v42 = vmul.f32 0.03125, %v1915_v41 }
0x11ab   : > { %v1917_v43 = vsub.f32 %v4355_v39, %v1916_v42 }
0x11ad   : > { %v1918_v44 = vmul.f32 %v1917_v43, %v1917_v43 }
0x11af   : > { %v1919_v45 = vsel %vm800_vm1, %v1918_v44, 0.0 }
0x11b0   : > { %1920 = vadd.xlane.f32.xlu0 %v1919_v45 }
0x123d   : > { %v1921_v51 = vpop.xlane.xlu0 %1920 }
0x123e   : > { %v1922_v52 = vmul.f32 0.03125, %v1921_v51 }
0x1240   : > { %v1923_v53 = vadd.f32 1e-06, %v1922_v52 }
0x1242   : > { %3737 = vrsqrt.f32 %v1923_v53 }
0x124c   : > { %v3738_v54 = vpop.eup %3737 }
0x124d   : > { %v1925_v56 = vmul.f32 %v3738_v54, %v1917_v43 }
0x124f   : > { %v1932_v58 = vmul.f32 %v3158_v55, %v1925_v56 }
0x1251   : > { %v1939_v59 = vadd.f32 %v3159_v57, %v1932_v58 }
0x1253   : > { %3438 = vmatmul.mubr.msk.f32.vlgmr.msra.gmra.mrb[24].mxu1 %vm800_vm1, %v1939_v59 }
0x1254   : > { %3467 = vmatprep.mubr.msk.f32.mxu1 %vm3827_vm2, %v3828_v60 }
0x1326   : > { %v2022_v62 = vpop.f32.mrb[24].mxu1 }
0x1327   : > { %v4387_v63 = vadd.f32 %v3165_v61, %v2022_v62  ;;  %v3439_v0 = vpop.f32.mrb[25].mxu1 }
0x1329   : > { %2027 = vrot.lane.b32.xlu1 %v4387_v63, %s3830_s0  ;;  %s4711_s0 = smov 64  }
0x132d   : > { %2192 = vrot.lane.b32.xlu1 %v4387_v63, %s4709_s5 }
0x1331   : > { %2190 = vrot.lane.b32.xlu1 %v4387_v63, %s4710_s29 }
0x139b   : > { %v2028_v1 = vpop.permute.xlu1 %2027 }
0x139c   : > { %3441 = vmatpush3.xpose.msk.msra.mxu0 %vm922_vm3, %v2028_v1 }
0x139d   : > { %3445 = vmatprep.subr.mxu0 %v3828_v60 }
0x139f   : > { %3443 = vmatmul.mubr.msk.f32.vlgmr.msra.gmra.mrb[2].mxu0 %vm922_vm3, %v4387_v63  ;;  %v2193_v10 = vpop.permute.xlu1 %2192 }
0x13a0   : > { %3447 = vmatprep.mubr.msk.f32.mxu0 %vm3827_vm2, %v3828_v60 }
0x13a3   : > { %v2191_v18 = vpop.permute.xlu1 %2190 }
0x1472   : > { %v2099_v2 = vpop.f32.mrb[2].mxu0 }
0x1473   : > { %v2100_v4 = vadd.f32 %v4163_v14, %v2099_v2  ;;  %v3444_v5 = vpop.f32.mrb[3].mxu0 }
0x1474   : > { %v3180_v5 = vld [vmem:[%s4647_s8 + $0x28] sm:$0xff] }
0x1475   : > { %v2103_v6 = vsel %vm922_vm3, %v2100_v4, -inf }
0x1476   : > { %2104 = vmax.xlane.f32.xlu0 %v2103_v6 }
0x1503   : > { %v2105_v7 = vpop.xlane.xlu0 %2104 }
0x1504   : > { %v2106_v8 = vsub.f32 %v2100_v4, %v2105_v7  ;;  %v3179_v4 = vld [vmem:[%s4647_s8 + $0x20] sm:$0xff]  ;;  %v3181_v7 = vld [vmem:[%s4647_s8 + $0x30] sm:$0xff] }
0x1505   : > { %v3622_v6 = vpack.c.bf16 %v3180_v5, %v3179_v4  ;;  %v3212_v4 = vld [vmem:[%s4654_s15 + $0xe8] sm:$0xff] }
0x1506   : > { %v2107_v9 = vmul.f32 1.442695, %v2106_v8  ;;  %v3182_v8 = vld [vmem:[%s4647_s8 + $0x38] sm:$0xff] }
0x1508   : > { %3739 = vpow2.f32 %v2107_v9  ;;  %v3625_v9 = vpack.c.bf16 %v3182_v8, %v3181_v7  ;;  %v3214_v7 = vld [vmem:[%s4654_s15 + $0xf8] sm:$0xff] }
0x1512   : > { %v3740_v11 = vpop.eup %3739 }
0x1513   : > { %v2109_v12 = vsel %vm922_vm3, %v3740_v11, 0.0 }
0x1514   : > { %2110 = vadd.xlane.f32.xlu0 %v2109_v12 }
0x152a   : > { %2114 = vrot.lane.b32.xlu0 %v4387_v63, %s4711_s0 }
0x15a1   : > { %v2111_v13 = vpop.xlane.xlu0 %2110 }
0x15a2   : > { %3741 = vrcp.f32 %v2111_v13 }
0x15a5   : > { %v2115_v15 = vpop.permute.xlu0 %2114 }
0x15a6   : > { %3446 = vmatpush3.msra.mxu0 %v2115_v15 }
0x15a7   : > { %3450 = vmatprep.subr.mxu0 %v3828_v60 }
0x15ac   : > { %v3742_v16 = vpop.eup %3741 }
0x15ad   : > { %v2113_v17 = vmul.f32 %v3742_v16, %v3740_v11 }
0x15af   : > { %3448 = vmatmul.mubr.msk.f32.vlgmr.msra.gmra.mrb[4].mxu0 %vm922_vm3, %v2113_v17 }
0x15b0   : > { %3451 = vmatpush3.xpose.msk.msra.mxu0 %vm922_vm3, %v2193_v10  ;;  %3452 = vmatprep.mubr.msk.f32.mxu0 %vm3827_vm2, %v3828_v60 }
0x15b1   : > { %3455 = vmatprep.subr.mxu0 %v3828_v60 }
0x15b3   : > { %3453 = vmatmul.mubr.msk.f32.vlgmr.msra.gmra.mrb[6].mxu0 %vm922_vm3, %v2191_v18 }
0x15b4   : > { %3457 = vmatprep.mubr.msk.f32.mxu0 %vm3827_vm2, %v3828_v60 }
0x1682   : > { %v4415_v19 = vpop.f32.mrb[4].mxu0 }
0x1683   : > { %v3449_v20 = vpop.f32.mrb[5].mxu0 }
0x1686   : > { %v2264_v21 = vpop.f32.mrb[6].mxu0 }
0x1687   : > { %v2265_v22 = vadd.f32 %v4163_v14, %v2264_v21  ;;  %v3454_v23 = vpop.f32.mrb[7].mxu0 }
0x1689   : > { %v2268_v24 = vsel %vm922_vm3, %v2265_v22, -inf }
0x168a   : > { %2269 = vmax.xlane.f32.xlu1 %v2268_v24  ;;  %v3187_v24 = vld [vmem:[%s4651_s12 + $0x1] ss:$0 sm:$0xff] }
0x169b   : > { %2279 = vrot.lane.b32.xlu1 %v4387_v63, %s4712_s3  ;;  %s3221_s3 = sshll.u32 %s3980_s4, 4  ;;  %s3843_s4 = smov [#allocation2]  }
0x169c   : > { %s3765_s29 = sshll.u32 %s3843_s4, 4  ;;  %s3766_s29 = int_to_ptr.vmem [resolvable:$false] %s3765_s29 }
0x169d   : > { %s3767_s0 = scalar_lea.vmem %s3766_s29, 32 }
0x169f   : > { %2355 = vrot.lane.b32.xlu1 %v4387_v63, %s4713_s23 }
0x16a3   : > { %2522 = vrot.lane.b32.xlu1 %v4387_v63, %s4714_s1 }
0x1717   : > { %v2270_v25 = vpop.xlane.xlu1 %2269 }
0x1718   : > { %v2271_v26 = vsub.f32 %v2265_v22, %v2270_v25  ;;  %v3184_v22 = vld [vmem:[%s4648_s9 + $0x1] ss:$0 sm:$0xff] }
0x171a   : > { %v2272_v27 = vmul.f32 1.442695, %v2271_v26 }
0x171b   : > { %v2280_v28 = vpop.permute.xlu1 %2279 }
0x171c   : > { %3743 = vpow2.f32 %v2272_v27  ;;  %3456 = vmatpush3.msra.mxu0 %v2280_v28 }
0x171d   : > { %3460 = vmatprep.subr.mxu0 %v3828_v60 }
0x171f   : > { %v2356_v34 = vpop.permute.xlu1 %2355 }
0x1723   : > { %v2523_v36 = vpop.permute.xlu1 %2522 }
0x1726   : > { %v3744_v30 = vpop.eup %3743 }
0x1727   : > { %v2274_v31 = vsel %vm922_vm3, %v3744_v30, 0.0 }
0x1728   : > { %2275 = vadd.xlane.f32.xlu0 %v2274_v31 }
0x173e   : > { %2357 = vrot.lane.b32.xlu0 %v4387_v63, %s4715_s25 }
0x1742   : > { %2520 = vrot.lane.b32.xlu0 %v4387_v63, %s4716_s22 }
0x17b5   : > { %v2276_v32 = vpop.xlane.xlu0 %2275 }
0x17b6   : > { %3745 = vrcp.f32 %v2276_v32 }
0x17b9   : > { %v2358_v35 = vpop.permute.xlu0 %2357 }
0x17bd   : > { %v2521_v37 = vpop.permute.xlu0 %2520 }
0x17c0   : > { %v3746_v33 = vpop.eup %3745 }
0x17c1   : > { %v2278_v29 = vmul.f32 %v3746_v33, %v3744_v30 }
0x17c3   : > { %3458 = vmatmul.mubr.msk.f32.vlgmr.msra.gmra.mrb[8].mxu0 %vm922_vm3, %v2278_v29 }
0x17c4   : > { %3461 = vmatpush3.xpose.msk.msra.mxu0 %vm922_vm3, %v2358_v35  ;;  %3462 = vmatprep.mubr.msk.f32.mxu0 %vm3827_vm2, %v3828_v60  ;;  %v3194_v35 = vld [vmem:[%s4652_s13 + $0x30] sm:$0xff] }
0x17c5   : > { %3470 = vmatprep.subr.mxu0 %v3828_v60 }
0x17c7   : > { %3463 = vmatmul.mubr.msk.f32.vlgmr.msra.gmra.mrb[10].mxu0 %vm922_vm3, %v2356_v34  ;;  %v3192_v34 = vld [vmem:[%s4652_s13 + $0x20] sm:$0xff] }
0x17c8   : > { %3471 = vmatpush3.xpose.msk.msra.mxu0 %vm922_vm3, %v2523_v36  ;;  %3472 = vmatprep.mubr.msk.f32.mxu0 %vm3827_vm2, %v3828_v60  ;;  %v3195_v36 = vld [vmem:[%s4652_s13 + $0x38] sm:$0xff] }
0x17c9   : > { %3621 = vmatprep.subr.bf16.mxu0 %v3825_v3 }
0x17cb   : > { %3473 = vmatmul.mubr.msk.f32.vlgmr.msra.gmra.mrb[12].mxu0 %vm922_vm3, %v2521_v37  ;;  %v3631_v37 = vpack.c.bf16 %v3195_v36, %v3194_v35  ;;  %v3220_v35 = vld [vmem:[%s4660_s21] ss:$0 sm:$0xff] }
0x17cc   : > { %3488 = vmatprep.mubr.msk.f32.mxu0 %vm3827_vm2, %v3828_v60  ;;  %3623 = vmatpush3.bf16.msra.mxu0 %v3622_v6  ;;  %v3213_v6 = vld [vmem:[%s4654_s15 + $0xf0] sm:$0xff] }
0x17cd   : > { %3624 = vmatprep.subr.bf16.mxu0 %v3825_v3  ;;  %v3655_v8 = vpack.c.bf16 %v3214_v7, %v3213_v6 }
0x17d0   : > { %3626 = vmatpush3.bf16.msra.mxu0 %v3625_v9  ;;  %v3197_v9 = vld [vmem:[%s4653_s14 + $0x1] ss:$0 sm:$0xff] }
0x17d1   : > { %3633 = vmatprep.subr.bf16.mxu0 %v3825_v3 }
0x1896   : > { %v2351_v40 = vpop.f32.mrb[8].mxu0 }
0x1897   : > { %v3459_v41 = vpop.f32.mrb[9].mxu0 }
0x1898   : > { %v3200_v41 = vld [vmem:[%s4654_s15 + $0x88] sm:$0xff] }
0x189a   : > { %v2429_v42 = vpop.f32.mrb[10].mxu0 }
0x189b   : > { %v2430_v43 = vadd.f32 %v4163_v14, %v2429_v42  ;;  %v3464_v44 = vpop.f32.mrb[11].mxu0  ;;  %v3201_v42 = vld [vmem:[%s4654_s15 + $0x90] sm:$0xff] }
0x189c   : > { %v3202_v44 = vld [vmem:[%s4654_s15 + $0x98] sm:$0xff] }
0x189d   : > { %v2433_v45 = vsel %vm922_vm3, %v2430_v43, -inf }
0x189e   : > { %2434 = vmax.xlane.f32.xlu1 %v2433_v45  ;;  %v2594_v48 = vpop.f32.mrb[12].mxu0  ;;  %v3637_v45 = vpack.c.bf16 %v3202_v44, %v3201_v42 }
0x189f   : > { %v2595_v38 = vadd.f32 %v4163_v14, %v2594_v48  ;;  %v3474_v46 = vpop.f32.mrb[13].mxu0  ;;  %v3203_v48 = vld [vmem:[%s4654_s15 + $0xa0] sm:$0xff] }
0x18a1   : > { %v2598_v47 = vsel %vm922_vm3, %v2595_v38, -inf }
0x18a2   : > { %2599 = vmax.xlane.f32.xlu0 %v2598_v47 }
0x192b   : > { %v2435_v49 = vpop.xlane.xlu1 %2434 }
0x192c   : > { %v2436_v50 = vsub.f32 %v2430_v43, %v2435_v49 }
0x192e   : > { %v2437_v51 = vmul.f32 1.442695, %v2436_v50 }
0x192f   : > { %v2600_v52 = vpop.xlane.xlu0 %2599 }
0x1930   : > { %3747 = vpow2.f32 %v2437_v51  ;;  %v2601_v53 = vsub.f32 %v2595_v38, %v2600_v52  ;;  %v3204_v38 = vld [vmem:[%s4654_s15 + $0xa8] sm:$0xff]  ;;  %v3190_v52 = vld [vmem:[%s4656_s17 + $0x1] ss:$0 sm:$0xff] }
0x1931   : > { %v3640_v46 = vpack.c.bf16 %v3204_v38, %v3203_v48 }
0x1932   : > { %v2602_v54 = vmul.f32 1.442695, %v2601_v53 }
0x1934   : > { %3749 = vpow2.f32 %v2602_v54  ;;  %v3191_v54 = vld [vmem:[%s4657_s18 + $0x1] ss:$0 sm:$0xff] }
0x193a   : > { %v3748_v55 = vpop.eup %3747 }
0x193b   : > { %v2439_v56 = vsel %vm922_vm3, %v3748_v55, 0.0 }
0x193c   : > { %2440 = vadd.xlane.f32.xlu0 %v2439_v56 }
0x193e   : > { %v3750_v57 = vpop.eup %3749 }
0x193f   : > { %v2604_v58 = vsel %vm922_vm3, %v3750_v57, 0.0 }
0x1940   : > { %2605 = vadd.xlane.f32.xlu1 %v2604_v58  ;;  %v3206_v58 = vld [vmem:[%s4654_s15 + $0xb8] sm:$0xff] }
0x1951   : > { %2609 = vrot.lane.b32.xlu1 %v4387_v63, %s4717_s26  ;;  %s4720_s26 = smov 16  }
0x1952   : > { %2444 = vrot.lane.b32.xlu0 %v4387_v63, %s4718_s2  ;;  %s4721_s2 = smov 24  }
0x1955   : > { %2686 = vrot.lane.b32.xlu1 %v2351_v40, %s4719_s30  ;;  %v3199_v40 = vld [vmem:[%s4654_s15 + $0x80] sm:$0xff] }
0x1956   : > { %v3634_v43 = vpack.c.bf16 %v3200_v41, %v3199_v40 }
0x19c9   : > { %v2441_v14 = vpop.xlane.xlu0 %2440 }
0x19ca   : > { %3751 = vrcp.f32 %v2441_v14 }
0x19cd   : > { %v2606_v59 = vpop.xlane.xlu1 %2605  ;;  %v2445_v61 = vpop.permute.xlu0 %2444 }
0x19ce   : > { %3753 = vrcp.f32 %v2606_v59  ;;  %3466 = vmatpush3.msra.mxu1 %v2445_v61  ;;  %v3207_v59 = vld [vmem:[%s4654_s15 + $0xc0] sm:$0xff]  ;;  %v3208_v61 = vld [vmem:[%s4654_s15 + $0xc8] sm:$0xff] }
0x19cf   : > { %3475 = vmatprep.subr.mxu1 %v3828_v60 }
0x19d1   : > { %v2610_v1 = vpop.permute.xlu1 %2609 }
0x19d4   : > { %v3752_v62 = vpop.eup %3751 }
0x19d5   : > { %v2443_v0 = vmul.f32 %v3752_v62, %v3748_v55  ;;  %v2687_v16 = vpop.permute.xlu1 %2686  ;;  %v3646_v62 = vpack.c.bf16 %v3208_v61, %v3207_v59 }
0x19d6   : > { %v2697_v17 = vsel %vm922_vm3, %v4415_v19, %v2687_v16 }
0x19d7   : > { %3468 = vmatmul.mubr.msk.f32.vlgmr.msra.gmra.mrb[26].mxu1 %vm922_vm3, %v2443_v0  ;;  %v3209_v0 = vld [vmem:[%s4654_s15 + $0xd0] sm:$0xff] }
0x19d8   : > { %v3754_v2 = vpop.eup %3753  ;;  %3476 = vmatpush3.msra.mxu1 %v2610_v1  ;;  %3477 = vmatprep.mubr.msk.f32.mxu1 %vm3827_vm2, %v3828_v60  ;;  %v3210_v1 = vld [vmem:[%s4654_s15 + $0xd8] sm:$0xff] }
0x19d9   : > { %v2608_v63 = vmul.f32 %v3754_v2, %v3750_v57  ;;  %3627 = vmatprep.subr.bf16.mxu1 %v3825_v3  ;;  %v3205_v57 = vld [vmem:[%s4654_s15 + $0xb0] sm:$0xff]  ;;  %v3649_v2 = vpack.c.bf16 %v3210_v1, %v3209_v0 }
0x19da   : > { %v3643_v14 = vpack.c.bf16 %v3206_v58, %v3205_v57 }
0x19db   : > { %3478 = vmatmul.mubr.msk.f32.vlgmr.msra.gmra.mrb[28].mxu1 %vm922_vm3, %v2608_v63  ;;  %v3211_v63 = vld [vmem:[%s4654_s15 + $0xe0] sm:$0xff] }
0x19dc   : > { %3499 = vmatprep.mubr.msk.f32.mxu1 %vm3827_vm2, %v3828_v60  ;;  %v3652_v5 = vpack.c.bf16 %v3212_v4, %v3211_v63 }
0x1aaa   : > { %v2516_v11 = vpop.f32.mrb[26].mxu1 }
0x1aab   : > { %2690 = vrot.lane.b32.xlu0 %v2516_v11, %s4720_s26  ;;  %v3469_v12 = vpop.f32.mrb[27].mxu1  ;;  %s4722_s26 = sld [smem:[#allocation19_spill]] }
0x1aae   : > { %v2681_v13 = vpop.f32.mrb[28].mxu1 }
0x1aaf   : > { %2694 = vrot.lane.b32.xlu1 %v2681_v13, %s4721_s2  ;;  %v3479_v15 = vpop.f32.mrb[29].mxu1  ;;  %s674_s2 = sand.u32 1, %s3815_s28  }
0x1ab0   : > { %s675_s23 = scalar_lea.vmem [#allocation2], %s674_s2  ;;  %s3055_s30 = scalar_lea.sflag [#allocation3], %s674_s2 }
0x1ab1   : > { %s3067_s1 = sshll.u32 %s675_s23, 4  ;;  %s4597_s7 = scalar_lea.hbm %s4722_s26, %s3221_s3  ;;  %s4599_s1 = int_to_ptr.vmem [resolvable:$true] %s3067_s1 }
0x1ab2   : > { %s3761_s5 = scalar_lea.vmem %s4599_s1, 16  ;;  %p3768_p0 = scmp.lt.s32.totalorder %s4599_s1, %s3766_s29 }
0x1ab3   : > { %p3762_p11 = scmp.ne.s32.totalorder %s4599_s1, %s3761_s5  ;;  %p3769_p1 = scmp.lt.s32.totalorder %s3767_s0, %s3761_s5 }
0x1ab5   : > { %p3763_p12 = pnand %p3762_p11, %p3997_p5  ;;  %p3770_p2 = por %p3769_p1, %p3768_p0 }
0x1ab7   : > { %p3764_p13 = pneg %p3763_p12 }
0x1ab9   : > { %p3771_p3 = pnand %p3770_p2, %p3764_p13 }
0x1b1d   : > { %v2691_v10 = vpop.permute.xlu0 %2690 }
0x1b1e   : > { %v2698_v18 = vsel %vm1592_vm4, %v2697_v17, %v2691_v10 }
0x1b21   : > { %v2695_v20 = vpop.permute.xlu1 %2694 }
0x1b22   : > { %v2699_v21 = vsel %vm1594_vm5, %v2698_v18, %v2695_v20  ;;  %v3216_v18 = vld [vmem:[%s4655_s16 + $0x1] ss:$0 sm:$0xff] }
0x1b23   : > { %3489 = vmatmul.mubr.msk.f32.vlgmr.msra.gmra.mrb[14].mxu0 %vm800_vm1, %v2699_v21  ;;  %v3218_v21 = vld [vmem:[%s4658_s19 + $0x1] ss:$0 sm:$0xff] }
0x1b24   : > { %3534 = vmatprep.mubr.msk.f32.mxu0 %vm3827_vm2, %v3828_v60  ;;  %3635 = vmatpush3.bf16.msra.mxu0 %v3634_v43 }
0x1b25   : > { %3636 = vmatprep.subr.bf16.mxu0 %v3825_v3 }
0x1b28   : > { %3638 = vmatpush3.bf16.msra.mxu0 %v3637_v45 }
0x1b29   : > { %3639 = vmatprep.subr.bf16.mxu0 %v3825_v3 }
0x1b2c   : > { %3641 = vmatpush3.bf16.msra.mxu0 %v3640_v46 }
0x1b2d   : > { %3642 = vmatprep.subr.bf16.mxu0 %v3825_v3 }
0x1b30   : > { %3644 = vmatpush3.bf16.msra.mxu0 %v3643_v14 }
0x1b31   : > { %3645 = vmatprep.subr.bf16.mxu0 %v3825_v3 }
0x1b34   : > { %3647 = vmatpush3.bf16.msra.mxu0 %v3646_v62 }
0x1b35   : > { %3648 = vmatprep.subr.bf16.mxu0 %v3825_v3 }
0x1b38   : > { %3650 = vmatpush3.bf16.msra.mxu0 %v3649_v2 }
0x1b39   : > { %3651 = vmatprep.subr.bf16.mxu0 %v3825_v3 }
0x1b3c   : > { %3653 = vmatpush3.bf16.msra.mxu0 %v3652_v5 }
0x1b3d   : > { %3654 = vmatprep.subr.bf16.mxu0 %v3825_v3 }
0x1b40   : > { %3656 = vmatpush3.bf16.msra.mxu0 %v3655_v8 }
0x1bf6   : > { %v2782_v23 = vpop.f32.mrb[14].mxu0 }
0x1bf7   : > { %v2783_v19 = vadd.f32 %v3184_v22, %v2782_v23  ;;  %v3490_v25 = vpop.f32.mrb[15].mxu0 }
0x1bf9   : > { %v2794_v26 = vmul.f32 %v3187_v24, %v2783_v19 }
0x1bfb   : > { %v4493_v27 = vadd.f32 %v2794_v26, %v4355_v39  ;;  %v3193_v39 = vld [vmem:[%s4652_s13 + $0x28] sm:$0xff] }
0x1bfc   : > { %v3628_v29 = vpack.c.bf16 %v3193_v39, %v3192_v34 }
0x1bfd   : > { %v2800_v28 = vsel %vm800_vm1, %v4493_v27, 0.0 }
0x1bfe   : > { %2801 = vadd.xlane.f32.xlu0 %v2800_v28  ;;  %3629 = vmatpush3.bf16.msra.mxu1 %v3628_v29 }
0x1bff   : > { %3630 = vmatprep.subr.bf16.mxu1 %v3825_v3 }
0x1c02   : > { %3632 = vmatpush3.bf16.msra.mxu1 %v3631_v37 }
0x1c8b   : > { %v2802_v60 = vpop.xlane.xlu0 %2801 }
0x1c8c   : > { %v2803_v30 = vmul.f32 0.03125, %v2802_v60 }
0x1c8e   : > { %v2804_v31 = vsub.f32 %v4493_v27, %v2803_v30 }
0x1c90   : > { %v2805_v32 = vmul.f32 %v2804_v31, %v2804_v31 }
0x1c92   : > { %v2806_v33 = vsel %vm800_vm1, %v2805_v32, 0.0 }
0x1c93   : > { %2807 = vadd.xlane.f32.xlu1 %v2806_v33 }
0x1d20   : > { %v2808_v47 = vpop.xlane.xlu1 %2807 }
0x1d21   : > { %v2809_v49 = vmul.f32 0.03125, %v2808_v47 }
0x1d23   : > { %v2810_v50 = vadd.f32 1e-06, %v2809_v49 }
0x1d25   : > { %3755 = vrsqrt.f32 %v2810_v50 }
0x1d2f   : > { %v3756_v51 = vpop.eup %3755 }
0x1d30   : > { %v2812_v53 = vmul.f32 %v3756_v51, %v2804_v31 }
0x1d32   : > { %v2819_v55 = vmul.f32 %v3190_v52, %v2812_v53 }
0x1d34   : > { %v2826_v56 = vadd.f32 %v3191_v54, %v2819_v55 }
0x1d36   : > { %3500 = vmatmul.mubr.msk.f32.vlgmr.msra.gmra.mrb[30].mxu1 %vm800_vm1, %v2826_v56 }
0x1e09   : > { %v2909_v11 = vpop.f32.mrb[30].mxu1 }
0x1e0a   : > { %v2910_v12 = vadd.f32 %v3197_v9, %v2909_v11  ;;  %v3501_v13 = vpop.f32.mrb[31].mxu1 }
0x1e0c   : > { %v2914_v15 = vmul.f32 0.70710677, %v2910_v12  ;;  %v2913_v16 = vmul.f32 0.5, %v2910_v12 }
0x1e0e   : > { %3757 = verf.f32 %v2914_v15 }
0x1e18   : > { %v3758_v3 = vpop.eup %3757 }
0x1e19   : > { %v2916_v10 = vadd.f32 1.0, %v3758_v3 }
0x1e1b   : > { %v2917_v17 = vmul.f32 %v2916_v10, %v2913_v16 }
0x1e1d   : > { %3535 = vmatmul.mubr.f32.vlgmr.msra.gmra.mrb[16].mxu0 %v2917_v17 }
0x1ef0   : > { %v3009_v20 = vpop.f32.mrb[16].mxu0 }
0x1ef1   : > { %v3010_v22 = vadd.f32 %v3216_v18, %v3009_v20  ;;  %v3536_v23 = vpop.f32.mrb[17].mxu0 }
0x1ef3   : > { %v3021_v24 = vmul.f32 %v3218_v21, %v3010_v22 }
0x1ef5   : > { %v3022_v19 = vadd.f32 %v3021_v24, %v4493_v27  ;;  %v3219_v27 = vld [vmem:[%s4659_s20] ss:$0 sm:$0xff] }
0x1ef7   : > { %v3025_v25 = vsel %vm800_vm1, %v3022_v19, 0.0 }
0x1ef8   : > { %3026 = vadd.xlane.f32.xlu0 %v3025_v25 }
0x1f85   : > { %v3027_v26 = vpop.xlane.xlu0 %3026 }
0x1f86   : > { %v3028_v28 = vmul.f32 0.03125, %v3027_v26 }
0x1f88   : > { %v3029_v60 = vsub.f32 %v3022_v19, %v3028_v28 }
0x1f8a   : > { %v3030_v30 = vmul.f32 %v3029_v60, %v3029_v60 }
0x1f8c   : > { %v3031_v31 = vsel %vm800_vm1, %v3030_v30, 0.0 }
0x1f8d   : > { %3032 = vadd.xlane.f32.xlu0 %v3031_v31 }
0x201a   : > { %v3033_v32 = vpop.xlane.xlu0 %3032 }
0x201b   : > { %v3034_v33 = vmul.f32 0.03125, %v3033_v32 }
0x201d   : > { %v3035_v34 = vadd.f32 1e-06, %v3034_v33 }
0x201f   : > { %3759 = vrsqrt.f32 %v3035_v34 }
0x2029   : > { %v3760_v39 = vpop.eup %3759 }
0x202a   : > { %v3037_v29 = vmul.f32 %v3760_v39, %v3029_v60 }
0x202c   : > { %v3044_v36 = vmul.f32 %v3219_v27, %v3037_v29 }
0x202e   : > { %v3051_v37 = vadd.f32 %v3220_v35, %v3044_v36 }
0x2030   : > { %3053 = vst.msk [vmem:[%s675_s23] sm:$0x1] %vm3052_vm6, %v3051_v37 }
0x2031   : > { %3774 = shalt.err (!%p3771_p3)
}
0x2032   : > { %s3775_s2 = scalar_lea.hbm %s4597_s7, 16  ;;  %s3779_s25 = scalar_lea.hbm %s4722_s26, 32 }
0x2033   : > { %p3776_p4 = scmp.ne.s32.totalorder %s4597_s7, %s3775_s2  ;;  %p3780_p9 = scmp.lt.u32.totalorder %s4597_s7, %s4722_s26 }
0x2034   : > { %p3781_p10 = scmp.lt.u32.totalorder %s3779_s25, %s3775_s2  ;;  %p3783_p12 = scmp.lt.u32.totalorder %s3775_s2, %s4597_s7 }
0x2035   : > { %p3777_p7 = pnand %p3776_p4, %p3997_p5 }
0x2036   : > { %p3782_p11 = por %p3781_p10, %p3780_p9 }
0x2037   : > { %p3778_p8 = pneg %p3777_p7 }
0x2038   : > { %p3784_p13 = por %p3783_p12, %p3782_p11 }
0x203a   : > { %p3785_p0 = pnand %p3784_p13, %p3778_p8 }
0x203c   : > { %3788 = shalt.err (!%p3785_p0)
}
0x203d   : > { %3657 = dma.vmem_to_hbm [thread:$0]  (%p3997_p5), %s4599_s1, 16, %s4597_s7, %s3055_s30  }
0x203e PF: > { %s4723_s5 = sld [smem:[#allocation7_spill]]  ;;  %s4724_s29 = sld [smem:[#allocation5_spill]] }
0x2044   : > { %p3663_p1 = scmp.ge.s32.totalorder %s4723_s5, 2  ;;  %s3079_s3 = sand.u32 1, %s4724_s29  }
0x2045   : > { %s3080_s23 = scalar_lea.sflag [#allocation3], %s3079_s3 }
0x2046   : > { %p3660_p2 = pnand %p3663_p1, %p4001_p6 }
0x2048   : > { %3806 = dma.done.wait (!%p3660_p2), %s3080_s23, 16  }
0x2049   : > { %3808 = vsyncadd (!%p3660_p2), %s3080_s23, 4294967280  ;;  %s4726_s30 = sld [smem:[#allocation8_spill]]  ;;  %s4727_s2 = sld [smem:[#allocation6_spill]] }
0x204a   : > { %s4728_s29 = sld [smem:[#allocation9_spill]]  ;;  %s4729_s3 = smov %s3815_s28 }
0x204f   : > { %p32_p3 = scmp.ge.s32.totalorder %s4726_s30, 4   ;;  %s4730_s28 = smov %s4727_s2 }
0x2051   :  { %34 = sbr.rel (!%p32_p3) target bundleno = 13 (0xd), region = 157 }
0x2058   :  { %3084 = vsyncpa [#allocation3], 1 }
0x2059   :  { %3086 = vsyncpa [#allocation3 + $0x1], 1 }

</bundles_post_ra>
